<compile_context>
chip_gen: v5e
topology: v5e:2x2
jax: 0.10.0
libtpu: 0.0.40
codegen_flags: <defaults>
</compile_context>

<pallas_src>
import numpy as np
import jax
import jax.numpy as jnp
from jax import lax
from jax.experimental import pallas as pl

EPS = 1e-5
N = 2                         # batch (kernel geometry specialized to the test size)

# ---------------- static geometry (input 2x3x16x16) -------------------------
# phase A: 18x18 maps (stage-1/2 outputs) live in a 20x20 frame per image,
#          flattened row-major -> 400 lanes/image, 800 lanes total.
# phase B: 9x9 maps (stage-3/4 outputs) live in an 11x11 frame per image,
#          121 lanes/image, 242 lanes total.
SA = N * 400                  # 800  phase-A core width
SB = N * 121                  # 242  phase-B core width
L2 = 758                      # conv2 evaluated at core positions [21, 779)
L3 = 737                      # full-res conv3 anchors; y2 column = core - 21
L4 = 218                      # conv4 evaluated at core positions [12, 230)
L5 = 194                      # full-res conv5 anchors; y4 column = core - 12
CNT_A = float(N * 18 * 18)    # 648 valid positions for stage-1/2 BN stats
CNT_B = float(N * 9 * 9)      # 162
CNT_O = N * 4 * 4             # 32

OFF2 = tuple(20 * kh + kw for kh in range(3) for kw in range(3))
OFF3 = tuple(20 * kh + kw for kh in range(2) for kw in range(2))
OFF4 = tuple(11 * kh + kw for kh in range(3) for kw in range(3))
OFF5 = tuple(11 * kh + kw for kh in range(2) for kw in range(2))


# ---------------- trace-time constants (numpy) ------------------------------
def _build_constants():
    # mask rows: 1 on the real map positions of each padded frame.
    m_a = np.zeros((800,), np.float32)
    for n in range(N):
        for r in range(1, 19):
            for c in range(1, 19):
                m_a[n * 400 + r * 20 + c] = 1.0
    m_b = np.zeros((800,), np.float32)          # only first 242 entries used
    for n in range(N):
        for r in range(1, 10):
            for c in range(1, 10):
                m_b[n * 121 + r * 11 + c] = 1.0
    mask_slab = np.zeros((8, 800), np.float32)
    mask_slab[0] = m_a
    mask_slab[1] = m_b

    # gather slab: cols [0,121) = per-image stride-2 gather for stage 3
    # (full-res anchor 40*ho+2*wo -> 11x11 frame position (ho+1, wo+1)),
    # cols [121,137) = per-image gather for stage 5 (22*ho+2*wo -> 4*ho+wo).
    g = np.zeros((337, 137), np.float32)
    for ho in range(9):
        for wo in range(9):
            g[40 * ho + 2 * wo, 11 * (ho + 1) + (wo + 1)] = 1.0
    for ho in range(4):
        for wo in range(4):
            g[22 * ho + 2 * wo, 121 + 4 * ho + wo] = 1.0
    return mask_slab, g


_MASK_SLAB, _GSLAB = _build_constants()


# ---------------- the single fused kernel -----------------------------------
def fused_kernel(xm_ref, wb_ref, g_ref, o_ref):
    f32 = jnp.float32
    xm = xm_ref[...]                      # (16, 800)  x channels + mask rows
    wb = wb_ref[...]                      # (16, 226)  stacked weights + BN params

    x = xm[0:8, :]                        # (8, 800) input scattered into frames
    m_a = xm[8:9, :]                      # (1, 800) phase-A map mask
    m_b = xm[9:10, 0:SB]                  # (1, 242) phase-B map mask

    w2 = wb[0:8, 0:72]                    # (Cout, 9*Cin)
    w4 = wb[0:8, 72:144]
    w3 = wb[0:8, 144:176]                 # (Cout, 4*Cin)
    w5 = wb[0:16, 176:208]
    w1 = wb[0:8, 208:216]                 # (Cout, Cin)
    bnp = wb[:, 216:226]                  # col 2s = gamma_s, 2s+1 = beta_s

    g3 = g_ref[:, 0:121]                  # (337, 121) stage-3 per-image gather
    g5 = g_ref[0:73, 121:137]             # (73, 16)   stage-5 per-image gather

    def bn(c, mask, count, stage, cch, relu=True):
        # single-pass batch stats over the valid positions (lane-dense sums).
        cm = c if mask is None else c * mask
        s = jnp.sum(cm, axis=1, keepdims=True)
        q = jnp.sum(cm * c, axis=1, keepdims=True)
        inv = 1.0 / count
        mean = s * inv
        var = q * inv - mean * mean                       # biased variance
        gamma = bnp[0:cch, 2 * stage:2 * stage + 1]
        beta = bnp[0:cch, 2 * stage + 1:2 * stage + 2]
        scale = gamma * lax.rsqrt(var + EPS)
        shift = beta - mean * scale
        y = c * scale + shift
        return jnp.maximum(y, 0.0) if relu else y

    # ---- stage 1: conv1 (1x1, pad=1) + BN + ReLU ---------------------------
    c1 = jnp.dot(w1, x, preferred_element_type=f32)       # (8, 800)
    a1 = bn(c1, None, CNT_A, 0, 8) * m_a                  # zero the frame ring

    # ---- stage 2: conv2 (3x3, pad=1) + BN + ReLU ---------------------------
    stack2 = jnp.concatenate([a1[:, d:d + L2] for d in OFF2], axis=0)   # (72, 758)
    c2 = jnp.dot(w2, stack2, preferred_element_type=f32)                # (8, 758)
    y2 = bn(c2, m_a[:, 21:21 + L2], CNT_A, 1, 8)          # ring cols unused below

    # ---- stage 3: conv3 (2x2, stride 2) + BN + ReLU ------------------------
    stack3 = jnp.concatenate([y2[:, d:d + L3] for d in OFF3], axis=0)   # (32, 737)
    c3f = jnp.dot(w3, stack3, preferred_element_type=f32)               # (8, 737)
    c3 = jnp.concatenate(
        [jnp.dot(c3f[:, 0:337], g3, preferred_element_type=f32),
         jnp.dot(c3f[:, 400:737], g3, preferred_element_type=f32)],
        axis=1)                                                         # (8, 242)
    b3 = bn(c3, None, CNT_B, 2, 8) * m_b                  # zero the 11x11 ring

    # ---- stage 4: conv4 (3x3, pad=1) + BN + ReLU ---------------------------
    stack4 = jnp.concatenate([b3[:, d:d + L4] for d in OFF4], axis=0)   # (72, 218)
    c4 = jnp.dot(w4, stack4, preferred_element_type=f32)                # (8, 218)
    y4 = bn(c4, m_b[:, 12:12 + L4], CNT_B, 3, 8)

    # ---- stage 5: conv5 (2x2, stride 2) + BN (no ReLU) ---------------------
    stack5 = jnp.concatenate([y4[:, d:d + L5] for d in OFF5], axis=0)   # (32, 194)
    c5f = jnp.dot(w5, stack5, preferred_element_type=f32)               # (16, 194)
    c5 = jnp.concatenate(
        [jnp.dot(c5f[:, 0:73], g5, preferred_element_type=f32),
         jnp.dot(c5f[:, 121:194], g5, preferred_element_type=f32)],
        axis=1)                                                         # (16, 32)
    out = bn(c5, None, float(CNT_O), 4, 16, relu=False)

    # lane-dense store (last dim = 128 -> unmasked vst); wrapper slices [:, :32].
    o_ref[...] = jnp.concatenate([out, jnp.zeros((16, 96), f32)], axis=1)


# ---------------- wrapper -----------------------------------------------------
@jax.jit
def model_forward(x_nchw, p):
    f32 = jnp.float32

    # input slab: channels 0..7 (3 real + 5 zero), rows 8/9 = phase-A/B masks.
    xp = jnp.pad(x_nchw.astype(f32), ((0, 0), (0, 5), (2, 2), (2, 2)))  # (2,8,20,20)
    x_part = xp.transpose(1, 0, 2, 3).reshape(8, SA)                    # (8, 800)
    slab_x = jnp.concatenate([x_part, jnp.asarray(_MASK_SLAB)], axis=0)  # (16, 800)

    # weights pre-stacked as (Cout, taps*Cin), tap order kh-major (matches OFF*).
    def tapstack(w, taps, cout):
        return w.reshape(taps, 8, cout).transpose(2, 0, 1).reshape(cout, 8 * taps).astype(f32)

    w2 = tapstack(p['w2'], 9, 8)
    w4 = tapstack(p['w4'], 9, 8)
    w3 = tapstack(p['w3'], 4, 8)
    w5 = tapstack(p['w5'], 4, 16)
    w1 = jnp.pad(p['w1'].reshape(3, 8).T.astype(f32), ((0, 0), (0, 5)))  # (8, 8)

    def pad16(w):
        return jnp.pad(w, ((0, 16 - w.shape[0]), (0, 0)))

    def col16(v):
        return jnp.pad(v.astype(f32), (0, 16 - v.shape[0])).reshape(16, 1)

    bn_pack = jnp.concatenate(
        [col16(p[k]) for k in ('g1', 'bb1', 'g2', 'bb2', 'g3', 'bb3',
                               'g4', 'bb4', 'g5', 'bb5')], axis=1)       # (16, 10)

    slab_w = jnp.concatenate(
        [pad16(w2), pad16(w4), pad16(w3), w5, pad16(w1), bn_pack], axis=1)  # (16, 226)

    out_slab = pl.pallas_call(
        fused_kernel,
        out_shape=jax.ShapeDtypeStruct((16, 128), jnp.float32),
    )(slab_x, slab_w, jnp.asarray(_GSLAB))

    out = out_slab[:, :CNT_O].reshape(16, N, 4, 4).transpose(1, 0, 2, 3)  # NCHW
    return out


# ---------------- parameters & pure-JAX reference ----------------------------
def init_params(key):
    ks = jax.random.split(key, 10)

    def conv_w(k, kh, kw, cin, cout):
        bound = 1.0 / np.sqrt(kh * kw * cin)
        return jax.random.uniform(k, (kh, kw, cin, cout), jnp.float32, -bound, bound)

    def conv_b(k, kh, kw, cin, cout):
        bound = 1.0 / np.sqrt(kh * kw * cin)
        return jax.random.uniform(k, (cout,), jnp.float32, -bound, bound)

    p = {
        'w1': conv_w(ks[0], 1, 1, 3, 8),  'b1': conv_b(ks[1], 1, 1, 3, 8),
        'w2': conv_w(ks[2], 3, 3, 8, 8),  'b2': conv_b(ks[3], 3, 3, 8, 8),
        'w3': conv_w(ks[4], 2, 2, 8, 8),  'b3': conv_b(ks[5], 2, 2, 8, 8),
        'w4': conv_w(ks[6], 3, 3, 8, 8),  'b4': conv_b(ks[7], 3, 3, 8, 8),
        'w5': conv_w(ks[8], 2, 2, 8, 16), 'b5': conv_b(ks[9], 2, 2, 8, 16),
    }
    for i, c in zip(range(1, 6), (8, 8, 8, 8, 16)):
        p[f'g{i}'] = jnp.ones((c,), jnp.float32)
        p[f'bb{i}'] = jnp.zeros((c,), jnp.float32)
    return p


def ref_forward(x_nchw, p):
    """Pure-JAX reference (lax.conv, with conv biases) for correctness check."""
    def conv(x, w, b, stride, pad):
        y = lax.conv_general_dilated(
            x, w, (stride, stride), [(pad, pad), (pad, pad)],
            dimension_numbers=('NCHW', 'HWIO', 'NCHW'))
        return y + b.reshape(1, -1, 1, 1)

    def bn(x, g, bb):
        m = jnp.mean(x, axis=(0, 2, 3), keepdims=True)
        v = jnp.mean((x - m) ** 2, axis=(0, 2, 3), keepdims=True)
        return (x - m) * lax.rsqrt(v + EPS) * g.reshape(1, -1, 1, 1) \
               + bb.reshape(1, -1, 1, 1)

    x = x_nchw
    x = jax.nn.relu(bn(conv(x, p['w1'], p['b1'], 1, 1), p['g1'], p['bb1']))
    x = jax.nn.relu(bn(conv(x, p['w2'], p['b2'], 1, 1), p['g2'], p['bb2']))
    x = jax.nn.relu(bn(conv(x, p['w3'], p['b3'], 2, 0), p['g3'], p['bb3']))
    x = jax.nn.relu(bn(conv(x, p['w4'], p['b4'], 1, 1), p['g4'], p['bb4']))
    x = bn(conv(x, p['w5'], p['b5'], 2, 0), p['g5'], p['bb5'])
    return x


if __name__ == "__main__":
    key = jax.random.PRNGKey(0)
    kx, kp = jax.random.split(key)
    x_nchw = jax.random.normal(kx, (N, 3, 16, 16), jnp.float32)
    params = init_params(kp)

    out = jax.block_until_ready(model_forward(x_nchw, params))
    assert out.shape == (N, 16, 4, 4), out.shape

    # Reference includes the conv biases; the kernel omits them (they cancel
    # exactly in training-mode BatchNorm), so this also validates that claim.
    ref = ref_forward(x_nchw, params)
    err = float(jnp.max(jnp.abs(out - ref)))
    if not bool(jnp.allclose(out, ref, atol=3e-3, rtol=3e-3)):
        raise SystemExit(f"mismatch vs reference, max abs err = {err:e}")

    print("KERNEL_OK")
</pallas_src>

<mosaic_0001>
module attributes {stable_mosaic.version = 11 : i64} {
  func.func @fused_kernel(%arg0: memref<16x800xf32, #tpu.memory_space<vmem>>, %arg1: memref<16x226xf32, #tpu.memory_space<vmem>>, %arg2: memref<337x137xf32, #tpu.memory_space<vmem>>, %arg3: memref<16x128xf32, #tpu.memory_space<vmem>>) attributes {dimension_semantics = [], scalar_prefetch = 0 : i64, scratch_operands = 0 : i64, tpu.core_type = #tpu.core_type<tc>} {
    %c0 = arith.constant 0 : index
    %c0_0 = arith.constant 0 : index
    %0 = vector.load %arg0[%c0, %c0_0] : memref<16x800xf32, #tpu.memory_space<vmem>>, vector<16x800xf32>
    %c0_1 = arith.constant 0 : index
    %c0_2 = arith.constant 0 : index
    %1 = vector.load %arg1[%c0_1, %c0_2] : memref<16x226xf32, #tpu.memory_space<vmem>>, vector<16x226xf32>
    %2 = vector.extract_strided_slice %0 {offsets = [0, 0], sizes = [8, 800], strides = [1, 1]} : vector<16x800xf32> to vector<8x800xf32>
    %3 = vector.extract_strided_slice %0 {offsets = [8, 0], sizes = [1, 800], strides = [1, 1]} : vector<16x800xf32> to vector<1x800xf32>
    %4 = vector.extract_strided_slice %0 {offsets = [9, 0], sizes = [1, 242], strides = [1, 1]} : vector<16x800xf32> to vector<1x242xf32>
    %5 = vector.extract_strided_slice %1 {offsets = [0, 0], sizes = [8, 72], strides = [1, 1]} : vector<16x226xf32> to vector<8x72xf32>
    %6 = vector.extract_strided_slice %1 {offsets = [0, 72], sizes = [8, 72], strides = [1, 1]} : vector<16x226xf32> to vector<8x72xf32>
    %7 = vector.extract_strided_slice %1 {offsets = [0, 144], sizes = [8, 32], strides = [1, 1]} : vector<16x226xf32> to vector<8x32xf32>
    %8 = vector.extract_strided_slice %1 {offsets = [0, 176], sizes = [16, 32], strides = [1, 1]} : vector<16x226xf32> to vector<16x32xf32>
    %9 = vector.extract_strided_slice %1 {offsets = [0, 208], sizes = [8, 8], strides = [1, 1]} : vector<16x226xf32> to vector<8x8xf32>
    %10 = vector.extract_strided_slice %1 {offsets = [0, 216], sizes = [16, 10], strides = [1, 1]} : vector<16x226xf32> to vector<16x10xf32>
    %c0_3 = arith.constant 0 : index
    %c0_4 = arith.constant 0 : index
    %11 = vector.load %arg2[%c0_3, %c0_4] : memref<337x137xf32, #tpu.memory_space<vmem>>, vector<337x121xf32>
    %c0_5 = arith.constant 0 : index
    %c121 = arith.constant 121 : index
    %12 = vector.load %arg2[%c0_5, %c121] : memref<337x137xf32, #tpu.memory_space<vmem>>, vector<73x16xf32>
    %cst = arith.constant dense<0.000000e+00> : vector<8x800xf32>
    %13 = tpu.matmul %9, %2, %cst {dimension_numbers = #tpu.dot_dimension_numbers<[1], [0], [0], [1], [0, 0, 1, 1], [], []>} : vector<8x8xf32>, vector<8x800xf32>, vector<8x800xf32> -> vector<8x800xf32>
    %cst_6 = arith.constant dense<0.000000e+00> : vector<8xf32>
    %14 = vector.multi_reduction <add>, %13, %cst_6 [1] : vector<8x800xf32> to vector<8xf32>
    %15 = vector.shape_cast %14 : vector<8xf32> to vector<8x1xf32>
    %16 = arith.mulf %13, %13 : vector<8x800xf32>
    %cst_7 = arith.constant dense<0.000000e+00> : vector<8xf32>
    %17 = vector.multi_reduction <add>, %16, %cst_7 [1] : vector<8x800xf32> to vector<8xf32>
    %18 = vector.shape_cast %17 : vector<8xf32> to vector<8x1xf32>
    %cst_8 = arith.constant 0.00154320989 : f32
    %19 = vector.broadcast %cst_8 : f32 to vector<8x1xf32>
    %20 = arith.mulf %15, %19 : vector<8x1xf32>
    %cst_9 = arith.constant 0.00154320989 : f32
    %21 = vector.broadcast %cst_9 : f32 to vector<8x1xf32>
    %22 = arith.mulf %18, %21 : vector<8x1xf32>
    %23 = arith.mulf %20, %20 : vector<8x1xf32>
    %24 = arith.subf %22, %23 : vector<8x1xf32>
    %25 = vector.extract_strided_slice %10 {offsets = [0, 0], sizes = [8, 1], strides = [1, 1]} : vector<16x10xf32> to vector<8x1xf32>
    %26 = vector.extract_strided_slice %10 {offsets = [0, 1], sizes = [8, 1], strides = [1, 1]} : vector<16x10xf32> to vector<8x1xf32>
    %cst_10 = arith.constant 9.99999974E-6 : f32
    %27 = vector.broadcast %cst_10 : f32 to vector<8x1xf32>
    %28 = arith.addf %24, %27 : vector<8x1xf32>
    %29 = math.rsqrt %28 : vector<8x1xf32>
    %30 = arith.mulf %25, %29 : vector<8x1xf32>
    %31 = arith.mulf %20, %30 : vector<8x1xf32>
    %32 = arith.subf %26, %31 : vector<8x1xf32>
    %33 = vector.broadcast %30 : vector<8x1xf32> to vector<8x800xf32>
    %34 = arith.mulf %13, %33 : vector<8x800xf32>
    %35 = vector.broadcast %32 : vector<8x1xf32> to vector<8x800xf32>
    %36 = arith.addf %34, %35 : vector<8x800xf32>
    %cst_11 = arith.constant 0.000000e+00 : f32
    %37 = vector.broadcast %cst_11 : f32 to vector<8x800xf32>
    %38 = arith.maximumf %36, %37 : vector<8x800xf32>
    %39 = vector.broadcast %3 : vector<1x800xf32> to vector<8x800xf32>
    %40 = arith.mulf %38, %39 : vector<8x800xf32>
    %41 = vector.extract_strided_slice %40 {offsets = [0, 0], sizes = [8, 758], strides = [1, 1]} : vector<8x800xf32> to vector<8x758xf32>
    %42 = vector.extract_strided_slice %40 {offsets = [0, 1], sizes = [8, 758], strides = [1, 1]} : vector<8x800xf32> to vector<8x758xf32>
    %43 = vector.extract_strided_slice %40 {offsets = [0, 2], sizes = [8, 758], strides = [1, 1]} : vector<8x800xf32> to vector<8x758xf32>
    %44 = vector.extract_strided_slice %40 {offsets = [0, 20], sizes = [8, 758], strides = [1, 1]} : vector<8x800xf32> to vector<8x758xf32>
    %45 = vector.extract_strided_slice %40 {offsets = [0, 21], sizes = [8, 758], strides = [1, 1]} : vector<8x800xf32> to vector<8x758xf32>
    %46 = vector.extract_strided_slice %40 {offsets = [0, 22], sizes = [8, 758], strides = [1, 1]} : vector<8x800xf32> to vector<8x758xf32>
    %47 = vector.extract_strided_slice %40 {offsets = [0, 40], sizes = [8, 758], strides = [1, 1]} : vector<8x800xf32> to vector<8x758xf32>
    %48 = vector.extract_strided_slice %40 {offsets = [0, 41], sizes = [8, 758], strides = [1, 1]} : vector<8x800xf32> to vector<8x758xf32>
    %49 = vector.extract_strided_slice %40 {offsets = [0, 42], sizes = [8, 758], strides = [1, 1]} : vector<8x800xf32> to vector<8x758xf32>
    %50 = tpu.concatenate %41, %42, %43, %44, %45, %46, %47, %48, %49 in 0 : vector<8x758xf32>, vector<8x758xf32>, vector<8x758xf32>, vector<8x758xf32>, vector<8x758xf32>, vector<8x758xf32>, vector<8x758xf32>, vector<8x758xf32>, vector<8x758xf32> -> vector<72x758xf32>
    %cst_12 = arith.constant dense<0.000000e+00> : vector<8x758xf32>
    %51 = tpu.matmul %5, %50, %cst_12 {dimension_numbers = #tpu.dot_dimension_numbers<[1], [0], [0], [1], [0, 0, 1, 1], [], []>} : vector<8x72xf32>, vector<72x758xf32>, vector<8x758xf32> -> vector<8x758xf32>
    %52 = vector.extract_strided_slice %3 {offsets = [0, 21], sizes = [1, 758], strides = [1, 1]} : vector<1x800xf32> to vector<1x758xf32>
    %53 = vector.broadcast %52 : vector<1x758xf32> to vector<8x758xf32>
    %54 = arith.mulf %51, %53 : vector<8x758xf32>
    %cst_13 = arith.constant dense<0.000000e+00> : vector<8xf32>
    %55 = vector.multi_reduction <add>, %54, %cst_13 [1] : vector<8x758xf32> to vector<8xf32>
    %56 = vector.shape_cast %55 : vector<8xf32> to vector<8x1xf32>
    %57 = arith.mulf %54, %51 : vector<8x758xf32>
    %cst_14 = arith.constant dense<0.000000e+00> : vector<8xf32>
    %58 = vector.multi_reduction <add>, %57, %cst_14 [1] : vector<8x758xf32> to vector<8xf32>
    %59 = vector.shape_cast %58 : vector<8xf32> to vector<8x1xf32>
    %cst_15 = arith.constant 0.00154320989 : f32
    %60 = vector.broadcast %cst_15 : f32 to vector<8x1xf32>
    %61 = arith.mulf %56, %60 : vector<8x1xf32>
    %cst_16 = arith.constant 0.00154320989 : f32
    %62 = vector.broadcast %cst_16 : f32 to vector<8x1xf32>
    %63 = arith.mulf %59, %62 : vector<8x1xf32>
    %64 = arith.mulf %61, %61 : vector<8x1xf32>
    %65 = arith.subf %63, %64 : vector<8x1xf32>
    %66 = vector.extract_strided_slice %10 {offsets = [0, 2], sizes = [8, 1], strides = [1, 1]} : vector<16x10xf32> to vector<8x1xf32>
    %67 = vector.extract_strided_slice %10 {offsets = [0, 3], sizes = [8, 1], strides = [1, 1]} : vector<16x10xf32> to vector<8x1xf32>
    %cst_17 = arith.constant 9.99999974E-6 : f32
    %68 = vector.broadcast %cst_17 : f32 to vector<8x1xf32>
    %69 = arith.addf %65, %68 : vector<8x1xf32>
    %70 = math.rsqrt %69 : vector<8x1xf32>
    %71 = arith.mulf %66, %70 : vector<8x1xf32>
    %72 = arith.mulf %61, %71 : vector<8x1xf32>
    %73 = arith.subf %67, %72 : vector<8x1xf32>
    %74 = vector.broadcast %71 : vector<8x1xf32> to vector<8x758xf32>
    %75 = arith.mulf %51, %74 : vector<8x758xf32>
    %76 = vector.broadcast %73 : vector<8x1xf32> to vector<8x758xf32>
    %77 = arith.addf %75, %76 : vector<8x758xf32>
    %cst_18 = arith.constant 0.000000e+00 : f32
    %78 = vector.broadcast %cst_18 : f32 to vector<8x758xf32>
    %79 = arith.maximumf %77, %78 : vector<8x758xf32>
    %80 = vector.extract_strided_slice %79 {offsets = [0, 0], sizes = [8, 737], strides = [1, 1]} : vector<8x758xf32> to vector<8x737xf32>
    %81 = vector.extract_strided_slice %79 {offsets = [0, 1], sizes = [8, 737], strides = [1, 1]} : vector<8x758xf32> to vector<8x737xf32>
    %82 = vector.extract_strided_slice %79 {offsets = [0, 20], sizes = [8, 737], strides = [1, 1]} : vector<8x758xf32> to vector<8x737xf32>
    %83 = vector.extract_strided_slice %79 {offsets = [0, 21], sizes = [8, 737], strides = [1, 1]} : vector<8x758xf32> to vector<8x737xf32>
    %84 = tpu.concatenate %80, %81, %82, %83 in 0 : vector<8x737xf32>, vector<8x737xf32>, vector<8x737xf32>, vector<8x737xf32> -> vector<32x737xf32>
    %cst_19 = arith.constant dense<0.000000e+00> : vector<8x737xf32>
    %85 = tpu.matmul %7, %84, %cst_19 {dimension_numbers = #tpu.dot_dimension_numbers<[1], [0], [0], [1], [0, 0, 1, 1], [], []>} : vector<8x32xf32>, vector<32x737xf32>, vector<8x737xf32> -> vector<8x737xf32>
    %86 = vector.extract_strided_slice %85 {offsets = [0, 0], sizes = [8, 337], strides = [1, 1]} : vector<8x737xf32> to vector<8x337xf32>
    %cst_20 = arith.constant dense<0.000000e+00> : vector<8x121xf32>
    %87 = tpu.matmul %86, %11, %cst_20 {dimension_numbers = #tpu.dot_dimension_numbers<[1], [0], [0], [1], [0, 0, 1, 1], [], []>} : vector<8x337xf32>, vector<337x121xf32>, vector<8x121xf32> -> vector<8x121xf32>
    %88 = vector.extract_strided_slice %85 {offsets = [0, 400], sizes = [8, 337], strides = [1, 1]} : vector<8x737xf32> to vector<8x337xf32>
    %cst_21 = arith.constant dense<0.000000e+00> : vector<8x121xf32>
    %89 = tpu.matmul %88, %11, %cst_21 {dimension_numbers = #tpu.dot_dimension_numbers<[1], [0], [0], [1], [0, 0, 1, 1], [], []>} : vector<8x337xf32>, vector<337x121xf32>, vector<8x121xf32> -> vector<8x121xf32>
    %90 = tpu.concatenate %87, %89 in 1 : vector<8x121xf32>, vector<8x121xf32> -> vector<8x242xf32>
    %cst_22 = arith.constant dense<0.000000e+00> : vector<8xf32>
    %91 = vector.multi_reduction <add>, %90, %cst_22 [1] : vector<8x242xf32> to vector<8xf32>
    %92 = vector.shape_cast %91 : vector<8xf32> to vector<8x1xf32>
    %93 = arith.mulf %90, %90 : vector<8x242xf32>
    %cst_23 = arith.constant dense<0.000000e+00> : vector<8xf32>
    %94 = vector.multi_reduction <add>, %93, %cst_23 [1] : vector<8x242xf32> to vector<8xf32>
    %95 = vector.shape_cast %94 : vector<8xf32> to vector<8x1xf32>
    %cst_24 = arith.constant 0.00617283955 : f32
    %96 = vector.broadcast %cst_24 : f32 to vector<8x1xf32>
    %97 = arith.mulf %92, %96 : vector<8x1xf32>
    %cst_25 = arith.constant 0.00617283955 : f32
    %98 = vector.broadcast %cst_25 : f32 to vector<8x1xf32>
    %99 = arith.mulf %95, %98 : vector<8x1xf32>
    %100 = arith.mulf %97, %97 : vector<8x1xf32>
    %101 = arith.subf %99, %100 : vector<8x1xf32>
    %102 = vector.extract_strided_slice %10 {offsets = [0, 4], sizes = [8, 1], strides = [1, 1]} : vector<16x10xf32> to vector<8x1xf32>
    %103 = vector.extract_strided_slice %10 {offsets = [0, 5], sizes = [8, 1], strides = [1, 1]} : vector<16x10xf32> to vector<8x1xf32>
    %cst_26 = arith.constant 9.99999974E-6 : f32
    %104 = vector.broadcast %cst_26 : f32 to vector<8x1xf32>
    %105 = arith.addf %101, %104 : vector<8x1xf32>
    %106 = math.rsqrt %105 : vector<8x1xf32>
    %107 = arith.mulf %102, %106 : vector<8x1xf32>
    %108 = arith.mulf %97, %107 : vector<8x1xf32>
    %109 = arith.subf %103, %108 : vector<8x1xf32>
    %110 = vector.broadcast %107 : vector<8x1xf32> to vector<8x242xf32>
    %111 = arith.mulf %90, %110 : vector<8x242xf32>
    %112 = vector.broadcast %109 : vector<8x1xf32> to vector<8x242xf32>
    %113 = arith.addf %111, %112 : vector<8x242xf32>
    %cst_27 = arith.constant 0.000000e+00 : f32
    %114 = vector.broadcast %cst_27 : f32 to vector<8x242xf32>
    %115 = arith.maximumf %113, %114 : vector<8x242xf32>
    %116 = vector.broadcast %4 : vector<1x242xf32> to vector<8x242xf32>
    %117 = arith.mulf %115, %116 : vector<8x242xf32>
    %118 = vector.extract_strided_slice %117 {offsets = [0, 0], sizes = [8, 218], strides = [1, 1]} : vector<8x242xf32> to vector<8x218xf32>
    %119 = vector.extract_strided_slice %117 {offsets = [0, 1], sizes = [8, 218], strides = [1, 1]} : vector<8x242xf32> to vector<8x218xf32>
    %120 = vector.extract_strided_slice %117 {offsets = [0, 2], sizes = [8, 218], strides = [1, 1]} : vector<8x242xf32> to vector<8x218xf32>
    %121 = vector.extract_strided_slice %117 {offsets = [0, 11], sizes = [8, 218], strides = [1, 1]} : vector<8x242xf32> to vector<8x218xf32>
    %122 = vector.extract_strided_slice %117 {offsets = [0, 12], sizes = [8, 218], strides = [1, 1]} : vector<8x242xf32> to vector<8x218xf32>
    %123 = vector.extract_strided_slice %117 {offsets = [0, 13], sizes = [8, 218], strides = [1, 1]} : vector<8x242xf32> to vector<8x218xf32>
    %124 = vector.extract_strided_slice %117 {offsets = [0, 22], sizes = [8, 218], strides = [1, 1]} : vector<8x242xf32> to vector<8x218xf32>
    %125 = vector.extract_strided_slice %117 {offsets = [0, 23], sizes = [8, 218], strides = [1, 1]} : vector<8x242xf32> to vector<8x218xf32>
    %126 = vector.extract_strided_slice %117 {offsets = [0, 24], sizes = [8, 218], strides = [1, 1]} : vector<8x242xf32> to vector<8x218xf32>
    %127 = tpu.concatenate %118, %119, %120, %121, %122, %123, %124, %125, %126 in 0 : vector<8x218xf32>, vector<8x218xf32>, vector<8x218xf32>, vector<8x218xf32>, vector<8x218xf32>, vector<8x218xf32>, vector<8x218xf32>, vector<8x218xf32>, vector<8x218xf32> -> vector<72x218xf32>
    %cst_28 = arith.constant dense<0.000000e+00> : vector<8x218xf32>
    %128 = tpu.matmul %6, %127, %cst_28 {dimension_numbers = #tpu.dot_dimension_numbers<[1], [0], [0], [1], [0, 0, 1, 1], [], []>} : vector<8x72xf32>, vector<72x218xf32>, vector<8x218xf32> -> vector<8x218xf32>
    %129 = vector.extract_strided_slice %4 {offsets = [0, 12], sizes = [1, 218], strides = [1, 1]} : vector<1x242xf32> to vector<1x218xf32>
    %130 = vector.broadcast %129 : vector<1x218xf32> to vector<8x218xf32>
    %131 = arith.mulf %128, %130 : vector<8x218xf32>
    %cst_29 = arith.constant dense<0.000000e+00> : vector<8xf32>
    %132 = vector.multi_reduction <add>, %131, %cst_29 [1] : vector<8x218xf32> to vector<8xf32>
    %133 = vector.shape_cast %132 : vector<8xf32> to vector<8x1xf32>
    %134 = arith.mulf %131, %128 : vector<8x218xf32>
    %cst_30 = arith.constant dense<0.000000e+00> : vector<8xf32>
    %135 = vector.multi_reduction <add>, %134, %cst_30 [1] : vector<8x218xf32> to vector<8xf32>
    %136 = vector.shape_cast %135 : vector<8xf32> to vector<8x1xf32>
    %cst_31 = arith.constant 0.00617283955 : f32
    %137 = vector.broadcast %cst_31 : f32 to vector<8x1xf32>
    %138 = arith.mulf %133, %137 : vector<8x1xf32>
    %cst_32 = arith.constant 0.00617283955 : f32
    %139 = vector.broadcast %cst_32 : f32 to vector<8x1xf32>
    %140 = arith.mulf %136, %139 : vector<8x1xf32>
    %141 = arith.mulf %138, %138 : vector<8x1xf32>
    %142 = arith.subf %140, %141 : vector<8x1xf32>
    %143 = vector.extract_strided_slice %10 {offsets = [0, 6], sizes = [8, 1], strides = [1, 1]} : vector<16x10xf32> to vector<8x1xf32>
    %144 = vector.extract_strided_slice %10 {offsets = [0, 7], sizes = [8, 1], strides = [1, 1]} : vector<16x10xf32> to vector<8x1xf32>
    %cst_33 = arith.constant 9.99999974E-6 : f32
    %145 = vector.broadcast %cst_33 : f32 to vector<8x1xf32>
    %146 = arith.addf %142, %145 : vector<8x1xf32>
    %147 = math.rsqrt %146 : vector<8x1xf32>
    %148 = arith.mulf %143, %147 : vector<8x1xf32>
    %149 = arith.mulf %138, %148 : vector<8x1xf32>
    %150 = arith.subf %144, %149 : vector<8x1xf32>
    %151 = vector.broadcast %148 : vector<8x1xf32> to vector<8x218xf32>
    %152 = arith.mulf %128, %151 : vector<8x218xf32>
    %153 = vector.broadcast %150 : vector<8x1xf32> to vector<8x218xf32>
    %154 = arith.addf %152, %153 : vector<8x218xf32>
    %cst_34 = arith.constant 0.000000e+00 : f32
    %155 = vector.broadcast %cst_34 : f32 to vector<8x218xf32>
    %156 = arith.maximumf %154, %155 : vector<8x218xf32>
    %157 = vector.extract_strided_slice %156 {offsets = [0, 0], sizes = [8, 194], strides = [1, 1]} : vector<8x218xf32> to vector<8x194xf32>
    %158 = vector.extract_strided_slice %156 {offsets = [0, 1], sizes = [8, 194], strides = [1, 1]} : vector<8x218xf32> to vector<8x194xf32>
    %159 = vector.extract_strided_slice %156 {offsets = [0, 11], sizes = [8, 194], strides = [1, 1]} : vector<8x218xf32> to vector<8x194xf32>
    %160 = vector.extract_strided_slice %156 {offsets = [0, 12], sizes = [8, 194], strides = [1, 1]} : vector<8x218xf32> to vector<8x194xf32>
    %161 = tpu.concatenate %157, %158, %159, %160 in 0 : vector<8x194xf32>, vector<8x194xf32>, vector<8x194xf32>, vector<8x194xf32> -> vector<32x194xf32>
    %cst_35 = arith.constant dense<0.000000e+00> : vector<16x194xf32>
    %162 = tpu.matmul %8, %161, %cst_35 {dimension_numbers = #tpu.dot_dimension_numbers<[1], [0], [0], [1], [0, 0, 1, 1], [], []>} : vector<16x32xf32>, vector<32x194xf32>, vector<16x194xf32> -> vector<16x194xf32>
    %163 = vector.extract_strided_slice %162 {offsets = [0, 0], sizes = [16, 73], strides = [1, 1]} : vector<16x194xf32> to vector<16x73xf32>
    %cst_36 = arith.constant dense<0.000000e+00> : vector<16x16xf32>
    %164 = tpu.matmul %163, %12, %cst_36 {dimension_numbers = #tpu.dot_dimension_numbers<[1], [0], [0], [1], [0, 0, 1, 1], [], []>} : vector<16x73xf32>, vector<73x16xf32>, vector<16x16xf32> -> vector<16x16xf32>
    %165 = vector.extract_strided_slice %162 {offsets = [0, 121], sizes = [16, 73], strides = [1, 1]} : vector<16x194xf32> to vector<16x73xf32>
    %cst_37 = arith.constant dense<0.000000e+00> : vector<16x16xf32>
    %166 = tpu.matmul %165, %12, %cst_37 {dimension_numbers = #tpu.dot_dimension_numbers<[1], [0], [0], [1], [0, 0, 1, 1], [], []>} : vector<16x73xf32>, vector<73x16xf32>, vector<16x16xf32> -> vector<16x16xf32>
    %167 = tpu.concatenate %164, %166 in 1 : vector<16x16xf32>, vector<16x16xf32> -> vector<16x32xf32>
    %cst_38 = arith.constant dense<0.000000e+00> : vector<16xf32>
    %168 = vector.multi_reduction <add>, %167, %cst_38 [1] : vector<16x32xf32> to vector<16xf32>
    %169 = vector.shape_cast %168 : vector<16xf32> to vector<16x1xf32>
    %170 = arith.mulf %167, %167 : vector<16x32xf32>
    %cst_39 = arith.constant dense<0.000000e+00> : vector<16xf32>
    %171 = vector.multi_reduction <add>, %170, %cst_39 [1] : vector<16x32xf32> to vector<16xf32>
    %172 = vector.shape_cast %171 : vector<16xf32> to vector<16x1xf32>
    %cst_40 = arith.constant 3.125000e-02 : f32
    %173 = vector.broadcast %cst_40 : f32 to vector<16x1xf32>
    %174 = arith.mulf %169, %173 : vector<16x1xf32>
    %cst_41 = arith.constant 3.125000e-02 : f32
    %175 = vector.broadcast %cst_41 : f32 to vector<16x1xf32>
    %176 = arith.mulf %172, %175 : vector<16x1xf32>
    %177 = arith.mulf %174, %174 : vector<16x1xf32>
    %178 = arith.subf %176, %177 : vector<16x1xf32>
    %179 = vector.extract_strided_slice %10 {offsets = [0, 8], sizes = [16, 1], strides = [1, 1]} : vector<16x10xf32> to vector<16x1xf32>
    %180 = vector.extract_strided_slice %10 {offsets = [0, 9], sizes = [16, 1], strides = [1, 1]} : vector<16x10xf32> to vector<16x1xf32>
    %cst_42 = arith.constant 9.99999974E-6 : f32
    %181 = vector.broadcast %cst_42 : f32 to vector<16x1xf32>
    %182 = arith.addf %178, %181 : vector<16x1xf32>
    %183 = math.rsqrt %182 : vector<16x1xf32>
    %184 = arith.mulf %179, %183 : vector<16x1xf32>
    %185 = arith.mulf %174, %184 : vector<16x1xf32>
    %186 = arith.subf %180, %185 : vector<16x1xf32>
    %187 = vector.broadcast %184 : vector<16x1xf32> to vector<16x32xf32>
    %188 = arith.mulf %167, %187 : vector<16x32xf32>
    %189 = vector.broadcast %186 : vector<16x1xf32> to vector<16x32xf32>
    %190 = arith.addf %188, %189 : vector<16x32xf32>
    %cst_43 = arith.constant 0.000000e+00 : f32
    %191 = vector.broadcast %cst_43 : f32 to vector<16x96xf32>
    %192 = tpu.concatenate %190, %191 in 1 : vector<16x32xf32>, vector<16x96xf32> -> vector<16x128xf32>
    %c0_44 = arith.constant 0 : index
    %c0_45 = arith.constant 0 : index
    %193 = vector.load %arg3[%c0_44, %c0_45] : memref<16x128xf32, #tpu.memory_space<vmem>>, vector<16x128xf32>
    tpu.vector_store %arg3[%c0_44, %c0_45], %192 {strides = array<i32>} : memref<16x128xf32, #tpu.memory_space<vmem>>, vector<16x128xf32>,
    return
  }
}

</mosaic_0001>

<bundles_post_ra>
// kernel: model_forward.1
= control target key start
LH: loop header
LB: loop body
LE: loop exit
PB: predicated region body
PF: predicated region fallthrough
CT: control target
= control target key end

     0   :  { %s2019_s14 = smov 48   ;;  %vm88_vm0 = vcmask 64512   ;;  %vm236_vm1 = vcmask 261120   ;;  %v2020_v37 = vmov 88   ;;  %s2021_s29 = smov 1   ;;  %v2022_v54 = vmov 89   ;;  %s2969_s1 = inlined_call_operand.vmem [shape: f32[16,226], index: 1, kind: input, shape index: {}]   ;;  %s2970_s0 = inlined_call_operand.vmem [shape: f32[16,800], index: 0, kind: input, shape index: {}]   ;;  %s2971_s2 = inlined_call_operand.vmem [shape: f32[337,137], index: 2, kind: input, shape index: {}]   ;;  %s2972_s3 = inlined_call_operand.vmem [shape: f32[16,128], index: 3, kind: output, shape index: {}]  }
   0x1   :  { %v2073_v0 = vld [vmem:[%s2969_s1 + $0x8] sm:$0xff]  ;;  %v14_v1 = vld [vmem:[%s2970_s0] sm:$0xff]  ;;  %v16_v2 = vld [vmem:[%s2970_s0 + $0x10] sm:$0xff]  ;;  %1746 = vset.pattern.permute.xlu2 %v2020_v37  ;;  %s2023_s15 = smov 106   ;;  %s2024_s16 = smov 86   ;;  %vm528_vm5 = vcmask 703488  }
   0x2   :  { %86 = vrot.lane.b32.xlu0 %v2073_v0, %s2019_s14  ;;  %v17_v3 = vld [vmem:[%s2970_s0 + $0x18] sm:$0xff]  ;;  %106 = vmatpush.msra.mxu0 %v14_v1  ;;  %v19_v4 = vld [vmem:[%s2970_s0 + $0x28] sm:$0xff]  ;;  %v20_v6 = vld [vmem:[%s2970_s0 + $0x30] sm:$0xff]  ;;  %s2025_s17 = smov 87   ;;  %s2026_s18 = smov 88   ;;  %vm501_vm6 = vcmask 711680  }
   0x3   :  { %146 = vmatpush.msra.mxu2 %v16_v2  ;;  %166 = vmatpush.msra.mxu3 %v17_v3  ;;  %v15_v5 = vld [vmem:[%s2970_s0 + $0x8] sm:$0xff]  ;;  %v18_v8 = vld [vmem:[%s2970_s0 + $0x20] sm:$0xff]  ;;  %v2137_v58 = vld [vmem:[%s2970_s0 + $0x38] sm:$0xff]  ;;  %s2027_s19 = smov 107   ;;  %s2028_s20 = smov 108   ;;  %vm474_vm7 = vcmask 719872  }
   0x4   :  { %206 = vmatpush.msra.mxu1 %v19_v4  ;;  %126 = vmatpush.msrb.mxu0 %v15_v5  ;;  %v2142_v59 = vld [vmem:[%s2970_s0 + $0x40] sm:$0xff]  ;;  %v2147_v60 = vld [vmem:[%s2970_s0 + $0x48] sm:$0xff]  ;;  %v310_v3 = vperm.slane %v2137_v58, 0  ;;  %s2029_s21 = smov 126   ;;  %s2030_s24 = smov 127   ;;  %vm447_vm8 = vcmask 867328  }
   0x5   :  { %226 = vmatpush.msrb.mxu2 %v20_v6  ;;  %v2158_v1 = vld [vmem:[%s2970_s0 + $0x60] sm:$0xff]  ;;  %v311_v4 = vperm.slane %v2142_v59, 0  ;;  %v312_v6 = vperm.slane %v2147_v60, 0  ;;  %vm420_vm9 = vcmask 875520   ;;  %vm393_vm10 = vcmask 883712   ;;  %s2033_s27 = smov 112  }
   0x6   :  { %vm366_vm11 = vcmask 1031168   ;;  %vm342_vm12 = vcmask 1039360   ;;  %vm541_vm13 = vcmask 588800   ;;  %vm708_vm14 = vcmask 965632   ;;  %s2034_s25 = smov 121   ;;  %s2037_s6 = smov 105  }
   0x7   :  { %s2038_s7 = smov 104   ;;  %s2039_s8 = smov 115  }
   0x8   :  { %s2041_s9 = smov 116   ;;  %s2042_s10 = smov 56  }
   0x9   :  { %s2046_s14 = smov 7  }
  0x74   :  { %v87_v7 = vpop.permute.xlu0 %86 }
  0x75   :  { %1680 = vmatmul.msk.f32.vlgmr.msra.gmra.mxu0 %vm88_vm0, %v87_v7  ;;  %1682 = vmatmul.msk.f32.vlgmr.msra.gmra.mxu2 %vm88_vm0, %v87_v7 }
  0x76   :  { %1683 = vmatmul.msk.f32.vlgmr.msra.gmra.mxu3 %vm88_vm0, %v87_v7  ;;  %1685 = vmatmul.msk.f32.vlgmr.msra.gmra.mxu1 %vm88_vm0, %v87_v7 }
  0x77   :  { %186 = vmatpush.msra.mxu0 %v18_v8 }
  0x7d   :  { %1681 = vmatmul.msk.f32.vlgmr.msrb.gmra.mxu0 %vm88_vm0, %v87_v7  ;;  %1686 = vmatmul.msk.f32.vlgmr.msrb.gmra.mxu2 %vm88_vm0, %v87_v7 }
  0x85   :  { %1684 = vmatmul.msk.f32.vlgmr.msra.gmra.mxu0 %vm88_vm0, %v87_v7 }
  0xf2   :  { %v2097_v9 = vpop.f32.mrf.mxu0 }
  0xf3   :  { %v241_v12 = vmul.f32 %v2097_v9, %v2097_v9  ;;  %v208_v23 = vpop.f32.mrf.mxu1 }
  0xf4   :  { %v246_v29 = vmul.f32 %v208_v23, %v208_v23 }
  0xf8   :  { %v2099_v10 = vpop.f32.mrf.mxu2 }
  0xf9   :  { %v243_v15 = vmul.f32 %v2099_v10, %v2099_v10  ;;  %v2112_v18 = vpop.f32.mrf.mxu3 }
  0xfa   :  { %v2101_v11 = vpop.f32.mrf.mxu0  ;;  %v244_v20 = vmul.f32 %v2112_v18, %v2112_v18 }
  0xfb   :  { %v231_v13 = vadd.f32 %v2101_v11, %v2097_v9  ;;  %v242_v14 = vmul.f32 %v2101_v11, %v2101_v11 }
  0xfd   :  { %v232_v16 = vadd.f32 %v231_v13, %v2099_v10  ;;  %v248_v17 = vadd.f32 %v242_v14, %v241_v12  ;;  %v315_v12 = vperm.slane %v2158_v1, 0 }
  0xff   :  { %v249_v19 = vadd.f32 %v248_v17, %v243_v15  ;;  %v233_v22 = vadd.f32 %v232_v16, %v2112_v18  ;;  %v2172_v17 = vld [vmem:[%s2970_s0 + $0x50] sm:$0xff] }
 0x100   :  { %v2116_v21 = vpop.f32.mrf.mxu2 }
 0x101   :  { %v250_v27 = vadd.f32 %v249_v19, %v244_v20  ;;  %v247_v28 = vmul.f32 %v2116_v21, %v2116_v21  ;;  %v237_v32 = vsel %vm236_vm1, %v2116_v21, 0.0 }
 0x102   :  { %v2119_v24 = vpop.f32.mrf.mxu0 }
 0x103   :  { %v234_v25 = vadd.f32 %v233_v22, %v2119_v24  ;;  %v245_v26 = vmul.f32 %v2119_v24, %v2119_v24  ;;  %v253_v35 = vsel %vm236_vm1, %v247_v28, 0.0 }
 0x105   :  { %v235_v30 = vadd.f32 %v234_v25, %v208_v23  ;;  %v251_v31 = vadd.f32 %v250_v27, %v245_v26  ;;  %v313_v27 = vperm.slane %v2172_v17, 0 }
 0x107   :  { %v238_v33 = vadd.f32 %v237_v32, %v235_v30  ;;  %v252_v34 = vadd.f32 %v251_v31, %v246_v29 }
 0x109   :  { %239 = vadd.xlane.f32.xlu0 %v238_v33  ;;  %v254_v36 = vadd.f32 %v253_v35, %v252_v34 }
 0x10b   :  { %255 = vadd.xlane.f32.xlu1 %v254_v36 }
 0x17c   :  { %v240_v38 = vpop.xlane.xlu0 %239 }
 0x17d   :  { %v257_v39 = vmul.f32 0.0015432099, %v240_v38  ;;  %v27_v38 = vld [vmem:[%s2970_s0 + $0x68] sm:$0xff] }
 0x17e   :  { %v256_v40 = vpop.xlane.xlu1 %255 }
 0x17f   :  { %v259_v41 = vmul.f32 %v257_v39, %v257_v39  ;;  %v258_v42 = vmul.f32 0.0015432099, %v256_v40  ;;  %v316_v40 = vperm.slane %v27_v38, 0 }
 0x181   :  { %v260_v43 = vsub.f32 %v258_v42, %v259_v41 }
 0x183   :  { %v261_v44 = vadd.f32 1e-05, %v260_v43 }
 0x185   :  { %2004 = vrsqrt.f32 %v261_v44  ;;  %vm268_vm3 = vweird.f32 %v261_v44 }
 0x18b   :  { %v2005_v45 = vpop.eup %2004 }
 0x18c   :  { %v263_v46 = vmul.f32 %v2005_v45, %v261_v44  ;;  %vm269_vm2 = vweird.f32 %v2005_v45 }
 0x18d   :  { %vm270_vm4 = vmor %vm268_vm3, %vm269_vm2  ;;  %vm980_vm3 = vcmask 1040384  }
 0x18e   :  { %v264_v47 = vmul.f32 %v2005_v45, %v263_v46 }
 0x190   :  { %v265_v48 = vmul.f32 0.5, %v264_v47 }
 0x192   :  { %v266_v49 = vsub.f32 1.5, %v265_v48 }
 0x194   :  { %v267_v50 = vmul.f32 %v2005_v45, %v266_v49 }
 0x196   :  { %v271_v51 = vsel %vm270_vm4, %v2005_v45, %v267_v50  ;;  %vm976_vm4 = vcmask 662528  }
 0x197   :  { %v272_v52 = vmul.f32 %v271_v51, %v2073_v0 }
 0x199   :  { %281 = vperm.xlu2 %1746, %v272_v52   ;;  %v273_v53 = vmul.f32 %v272_v52, %v257_v39 }
 0x19b   :  { %275 = vrot.lane.b32.xlu1 %v273_v53, %s2021_s29 }
 0x1a1   :  { %1747 = vset.pattern.permute.xlu2 %v2022_v54 }
 0x1f3   :  { %v2132_v57 = vpop.permute.xlu2 %281 }
 0x1f4   :  { %v284_v61 = vmul.f32 %v2132_v57, %v2097_v9  ;;  %v285_v62 = vmul.f32 %v2132_v57, %v2101_v11  ;;  %v286_v63 = vmul.f32 %v2132_v57, %v2099_v10  ;;  %v289_v2 = vmul.f32 %v2132_v57, %v208_v23 }
 0x1f5   :  { %v287_v10 = vmul.f32 %v2132_v57, %v2112_v18  ;;  %v288_v11 = vmul.f32 %v2132_v57, %v2119_v24  ;;  %v25_v18 = vld [vmem:[%s2970_s0 + $0x58] sm:$0xff]  ;;  %v290_v36 = vmul.f32 %v2132_v57, %v2116_v21 }
 0x1f6   :  { %v314_v29 = vperm.slane %v25_v18, 0 }
 0x20d   :  { %v276_v55 = vpop.permute.xlu1 %275 }
 0x20e   :  { %v278_v56 = vsub.f32 %v2073_v0, %v276_v55 }
 0x210   :  { %293 = vperm.xlu2 %1747, %v278_v56  }
 0x26a   :  { %v294_v5 = vpop.permute.xlu2 %293 }
 0x26b   :  { %v296_v7 = vadd.f32 %v294_v5, %v284_v61  ;;  %v297_v8 = vadd.f32 %v294_v5, %v285_v62  ;;  %v298_v9 = vadd.f32 %v294_v5, %v286_v63  ;;  %v301_v13 = vadd.f32 %v294_v5, %v289_v2 }
 0x26c   :  { %v299_v19 = vadd.f32 %v294_v5, %v287_v10  ;;  %v300_v20 = vadd.f32 %v294_v5, %v288_v11  ;;  %v302_v37 = vadd.f32 %v294_v5, %v290_v36 }
 0x26d   :  { %v303_v14 = vmax.f32 %v296_v7, 0.0  ;;  %v304_v15 = vmax.f32 %v297_v8, 0.0  ;;  %v305_v16 = vmax.f32 %v298_v9, 0.0  ;;  %v308_v22 = vmax.f32 %v301_v13, 0.0 }
 0x26e   :  { %v306_v30 = vmax.f32 %v299_v19, 0.0  ;;  %v307_v31 = vmax.f32 %v300_v20, 0.0  ;;  %v309_v39 = vmax.f32 %v302_v37, 0.0 }
 0x26f   :  { %v2179_v23 = vmul.f32 %v310_v3, %v303_v14  ;;  %v2183_v24 = vmul.f32 %v311_v4, %v304_v15  ;;  %v2187_v25 = vmul.f32 %v312_v6, %v305_v16  ;;  %v2191_v26 = vmul.f32 %v315_v12, %v308_v22 }
 0x270   :  { %v2201_v33 = vmul.f32 %v313_v27, %v306_v30  ;;  %v2203_v34 = vmul.f32 %v314_v29, %v307_v31  ;;  %v323_v41 = vmul.f32 %v316_v40, %v309_v39 }
 0x271   :  { %v1763_v28 = vpack.i.bf16 %v2183_v24, %v2179_v23  ;;  %v1788_v32 = vpack.i.bf16 %v2191_v26, %v2187_v25 }
 0x272   :  { %v1813_v35 = vpack.i.bf16 %v2203_v34, %v2201_v33 }
 0x273   :  { %1764 = vrot.lane.b32.xlu1 %v1763_v28, %s2023_s15  ;;  %1749 = vrot.lane.b32.xlu2 %v1763_v28, %s2024_s16 }
 0x274   :  { %1789 = vrot.lane.b32.xlu0 %v1788_v32, %s2025_s17 }
 0x27b   :  { %1774 = vrot.lane.b32.xlu1 %v1788_v32, %s2024_s16  ;;  %1754 = vrot.lane.b32.xlu2 %v1763_v28, %s2025_s17 }
 0x27c   :  { %1814 = vrot.lane.b32.xlu0 %v1813_v35, %s2023_s15 }
 0x283   :  { %1784 = vrot.lane.b32.xlu1 %v1813_v35, %s2025_s17  ;;  %1759 = vrot.lane.b32.xlu2 %v1763_v28, %s2026_s18 }
 0x284   :  { %1829 = vrot.lane.b32.xlu0 %v1813_v35, %s2027_s19 }
 0x28b   :  { %1799 = vrot.lane.b32.xlu1 %v1813_v35, %s2026_s18  ;;  %1769 = vrot.lane.b32.xlu2 %v1813_v35, %s2024_s16 }
 0x28c   :  { %1839 = vrot.lane.b32.xlu0 %v1813_v35, %s2028_s20 }
 0x293   :  { %1809 = vrot.lane.b32.xlu1 %v1763_v28, %s2029_s21  ;;  %1779 = vrot.lane.b32.xlu2 %v1763_v28, %s2027_s19 }
 0x294   :  { %1849 = vrot.lane.b32.xlu0 %v1813_v35, %s2029_s21 }
 0x29b   :  { %1824 = vrot.lane.b32.xlu1 %v1763_v28, %s2030_s24  ;;  %1794 = vrot.lane.b32.xlu2 %v1763_v28, %s2028_s20 }
 0x29c   :  { %1859 = vrot.lane.b32.xlu0 %v1813_v35, %s2030_s24 }
 0x2a3   :  { %526 = vrot.lane.b32.xlu1 %v323_v41, %s2024_s16  ;;  %1804 = vrot.lane.b32.xlu2 %v1788_v32, %s2026_s18 }
 0x2a4   :  { %418 = vrot.lane.b32.xlu0 %v323_v41, %s2027_s19 }
 0x2ab   :  { %499 = vrot.lane.b32.xlu1 %v323_v41, %s2025_s17  ;;  %1819 = vrot.lane.b32.xlu2 %v1788_v32, %s2023_s15 }
 0x2ac   :  { %674 = vrot.lane.b32.xlu0 %v311_v4, %s2027_s19 }
 0x2b3   :  { %472 = vrot.lane.b32.xlu1 %v323_v41, %s2026_s18  ;;  %1834 = vrot.lane.b32.xlu2 %v1788_v32, %s2027_s19 }
 0x2b4   :  { %680 = vrot.lane.b32.xlu0 %v314_v29, %s2027_s19 }
 0x2bb   :  { %445 = vrot.lane.b32.xlu1 %v323_v41, %s2023_s15  ;;  %1844 = vrot.lane.b32.xlu2 %v1788_v32, %s2028_s20 }
 0x2c3   :  { %1854 = vrot.lane.b32.xlu2 %v1788_v32, %s2029_s21  ;;  %672 = vrot.lane.b32.xlu1 %v310_v3, %s2027_s19 }
 0x2cb   :  { %1864 = vrot.lane.b32.xlu2 %v1788_v32, %s2030_s24  ;;  %678 = vrot.lane.b32.xlu1 %v313_v27, %s2027_s19 }
 0x2cd   :  { %v1750_v21 = vpop.permute.xlu2 %1749 }
 0x2ce   :  { %v1752_v42 = vunpack.i.h.bf16 %v1750_v21  ;;  %v1751_v43 = vunpack.i.l.bf16 %v1750_v21 }
 0x2d0   :  { %v529_v44 = vsel %vm528_vm5, %v1751_v43, %v1752_v42 }
 0x2d1   :  { %552 = vmatpush.msrb.mxu3 %v529_v44 }
 0x2d3   :  { %391 = vrot.lane.b32.xlu2 %v323_v41, %s2028_s20  ;;  %684 = vrot.lane.b32.xlu1 %v316_v40, %s2027_s19 }
 0x2d5   :  { %v1755_v45 = vpop.permute.xlu2 %1754 }
 0x2d6   :  { %v1757_v46 = vunpack.i.h.bf16 %v1755_v45  ;;  %v1756_v47 = vunpack.i.l.bf16 %v1755_v45 }
 0x2d8   :  { %v502_v48 = vsel %vm501_vm6, %v1756_v47, %v1757_v46 }
 0x2d9   :  { %553 = vmatpush.msrb.mxu3 %v502_v48 }
 0x2db   :  { %676 = vrot.lane.b32.xlu2 %v312_v6, %s2027_s19 }
 0x2dd   :  { %v1760_v49 = vpop.permute.xlu2 %1759 }
 0x2de   :  { %v1762_v50 = vunpack.i.h.bf16 %v1760_v49  ;;  %v1761_v51 = vunpack.i.l.bf16 %v1760_v49 }
 0x2e0   :  { %v475_v52 = vsel %vm474_vm7, %v1761_v51, %v1762_v50 }
 0x2e1   :  { %554 = vmatpush.msrb.mxu3 %v475_v52 }
 0x2e3   :  { %682 = vrot.lane.b32.xlu2 %v315_v12, %s2027_s19 }
 0x2e5   :  { %v2253_v53 = vpop.permute.xlu1 %1764  ;;  %v2255_v54 = vpop.permute.xlu2 %1769 }
 0x2e6   :  { %v2257_v55 = vpop.permute.xlu0 %1789  ;;  %v1767_v56 = vunpack.i.h.bf16 %v2253_v53  ;;  %v1766_v57 = vunpack.i.l.bf16 %v2253_v53  ;;  %v1772_v58 = vunpack.i.h.bf16 %v2255_v54  ;;  %v1771_v59 = vunpack.i.l.bf16 %v2255_v54 }
 0x2e7   :  { %v1791_v1 = vunpack.i.l.bf16 %v2257_v55 }
 0x2e8   :  { %v448_v60 = vsel %vm447_vm8, %v1766_v57, %v1767_v56  ;;  %v532_v61 = vsel %vm528_vm5, %v1771_v59, %v1772_v58 }
 0x2e9   :  { %555 = vmatpush.msrb.mxu3 %v448_v60  ;;  %612 = vmatpush.msra.mxu2 %v532_v61  ;;  %v503_v9 = vsel %vm501_vm6, %v1757_v46, %v1791_v1 }
 0x2ed   :  { %v2269_v62 = vpop.permute.xlu1 %1774  ;;  %v2271_v63 = vpop.permute.xlu2 %1779 }
 0x2ee   :  { %v2274_v2 = vpop.permute.xlu0 %1814  ;;  %v1776_v3 = vunpack.i.l.bf16 %v2269_v62  ;;  %v1782_v4 = vunpack.i.h.bf16 %v2271_v63  ;;  %v1781_v5 = vunpack.i.l.bf16 %v2271_v63 }
 0x2ef   :  { %v1817_v31 = vunpack.i.h.bf16 %v2274_v2  ;;  %v1816_v32 = vunpack.i.l.bf16 %v2274_v2 }
 0x2f0   :  { %v421_v6 = vsel %vm420_vm9, %v1781_v5, %v1782_v4  ;;  %v530_v7 = vsel %vm528_vm5, %v1752_v42, %v1776_v3  ;;  %v531_v8 = vsel %vm528_vm5, %v1776_v3, %v1771_v59 }
 0x2f1   :  { %556 = vmatpush.msrb.mxu3 %v421_v6  ;;  %572 = vmatpush.msrb.mxu0 %v530_v7  ;;  %v451_v21 = vsel %vm447_vm8, %v1816_v32, %v1817_v31  ;;  %v1777_v6 = vunpack.i.h.bf16 %v2269_v62  ;;  %v2377_v62 = vld [vmem:[%s2969_s1] sm:$0xff] }
 0x2f2   :  { %592 = vmatpush.msrb.mxu1 %v531_v8 }
 0x2f3   :  { %573 = vmatpush.msrb.mxu0 %v503_v9 }
 0x2f5   :  { %v2285_v10 = vpop.permute.xlu1 %1784  ;;  %v2287_v11 = vpop.permute.xlu2 %1794 }
 0x2f6   :  { %v2289_v12 = vpop.permute.xlu0 %1829  ;;  %v1787_v13 = vunpack.i.h.bf16 %v2285_v10  ;;  %v1786_v14 = vunpack.i.l.bf16 %v2285_v10  ;;  %v1797_v15 = vunpack.i.h.bf16 %v2287_v11  ;;  %v1796_v16 = vunpack.i.l.bf16 %v2287_v11 }
 0x2f7   :  { %v1832_v38 = vunpack.i.h.bf16 %v2289_v12  ;;  %v1831_v39 = vunpack.i.l.bf16 %v2289_v12 }
 0x2f8   :  { %v394_v17 = vsel %vm393_vm10, %v1796_v16, %v1797_v15  ;;  %v504_v19 = vsel %vm501_vm6, %v1791_v1, %v1786_v14  ;;  %v505_v20 = vsel %vm501_vm6, %v1786_v14, %v1787_v13 }
 0x2f9   :  { %557 = vmatpush.msrb.mxu3 %v394_v17  ;;  %593 = vmatpush.msrb.mxu1 %v504_v19  ;;  %v424_v44 = vsel %vm420_vm9, %v1831_v39, %v1832_v38  ;;  %v1792_v19 = vunpack.i.h.bf16 %v2257_v55 }
 0x2fa   :  { %613 = vmatpush.msra.mxu2 %v505_v20 }
 0x2fd   :  { %v2302_v22 = vpop.permute.xlu1 %1799  ;;  %v2304_v18 = vpop.permute.xlu2 %1804 }
 0x2fe   :  { %v2306_v27 = vpop.permute.xlu0 %1839  ;;  %v1802_v28 = vunpack.i.h.bf16 %v2302_v22  ;;  %v1801_v29 = vunpack.i.l.bf16 %v2302_v22  ;;  %v1806_v30 = vunpack.i.l.bf16 %v2304_v18  ;;  %v1807_v63 = vunpack.i.h.bf16 %v2304_v18 }
 0x2ff   :  { %v1842_v40 = vunpack.i.h.bf16 %v2306_v27  ;;  %v1841_v41 = vunpack.i.l.bf16 %v2306_v27 }
 0x300   :  { %v476_v35 = vsel %vm474_vm7, %v1762_v50, %v1806_v30  ;;  %v477_v36 = vsel %vm474_vm7, %v1806_v30, %v1801_v29  ;;  %v478_v37 = vsel %vm474_vm7, %v1801_v29, %v1802_v28 }
 0x301   :  { %574 = vmatpush.msrb.mxu0 %v476_v35  ;;  %594 = vmatpush.msrb.mxu1 %v477_v36  ;;  %v397_v51 = vsel %vm393_vm10, %v1841_v41, %v1842_v40 }
 0x302   :  { %614 = vmatpush.msra.mxu2 %v478_v37 }
 0x304   :  { %615 = vmatpush.msra.mxu2 %v451_v21 }
 0x305   :  { %v2325_v42 = vpop.permute.xlu1 %1809  ;;  %v2327_v43 = vpop.permute.xlu2 %1819 }
 0x306   :  { %v2332_v45 = vpop.permute.xlu0 %1849  ;;  %v1812_v46 = vunpack.i.h.bf16 %v2325_v42  ;;  %v1811_v47 = vunpack.i.l.bf16 %v2325_v42  ;;  %v1821_v48 = vunpack.i.l.bf16 %v2327_v43  ;;  %616 = vmatpush.msra.mxu2 %v424_v44  ;;  %v1822_v20 = vunpack.i.h.bf16 %v2327_v43 }
 0x307   :  { %v1852_v49 = vunpack.i.h.bf16 %v2332_v45  ;;  %v1851_v50 = vunpack.i.l.bf16 %v2332_v45 }
 0x308   :  { %617 = vmatpush.msra.mxu2 %v397_v51  ;;  %v367_v52 = vsel %vm366_vm11, %v1811_v47, %v1812_v46  ;;  %v449_v57 = vsel %vm447_vm8, %v1767_v56, %v1821_v48  ;;  %v450_v59 = vsel %vm447_vm8, %v1821_v48, %v1816_v32  ;;  %v506_v32 = vsel %vm501_vm6, %v1787_v13, %v1792_v19 }
 0x309   :  { %558 = vmatpush.msrb.mxu3 %v367_v52  ;;  %575 = vmatpush.msrb.mxu0 %v449_v57  ;;  %v370_v60 = vsel %vm366_vm11, %v1851_v50, %v1852_v49  ;;  %v452_v13 = vsel %vm447_vm8, %v1817_v31, %v1822_v20 }
 0x30a   :  { %595 = vmatpush.msrb.mxu1 %v450_v59  ;;  %618 = vmatpush.msra.mxu2 %v370_v60 }
 0x30d   :  { %v2356_v61 = vpop.permute.xlu1 %1824  ;;  %v2358_v1 = vpop.permute.xlu2 %1834 }
 0x30e   :  { %v2360_v53 = vpop.permute.xlu0 %1859  ;;  %v1827_v56 = vunpack.i.h.bf16 %v2356_v61  ;;  %v1826_v3 = vunpack.i.l.bf16 %v2356_v61  ;;  %v1836_v5 = vunpack.i.l.bf16 %v2358_v1  ;;  %v1837_v54 = vunpack.i.h.bf16 %v2358_v1 }
 0x30f   :  { %v1862_v7 = vunpack.i.h.bf16 %v2360_v53  ;;  %v1861_v8 = vunpack.i.l.bf16 %v2360_v53 }
 0x310   :  { %v343_v9 = vsel %vm342_vm12, %v1826_v3, %v1827_v56  ;;  %v422_v14 = vsel %vm420_vm9, %v1782_v4, %v1836_v5  ;;  %v423_v16 = vsel %vm420_vm9, %v1836_v5, %v1831_v39  ;;  %v533_v4 = vsel %vm528_vm5, %v1772_v58, %v1777_v6 }
 0x311   :  { %559 = vmatpush.msrb.mxu3 %v343_v9  ;;  %576 = vmatpush.msrb.mxu0 %v422_v14  ;;  %v346_v17 = vsel %vm342_vm12, %v1861_v8, %v1862_v7  ;;  %v425_v22 = vsel %vm420_vm9, %v1832_v38, %v1837_v54 }
 0x312   :  { %596 = vmatpush.msrb.mxu1 %v423_v16  ;;  %619 = vmatpush.msra.mxu2 %v346_v17 }
 0x313   :  { %560 = vmatpush.msrb.mxu3 %v2179_v23 }
 0x314   :  { %620 = vmatpush.msra.mxu2 %v2201_v33  ;;  %1687 = vmatmul.msk.f32.vlgmr.msrb.gmra.mxu3 %vm541_vm13, %v2377_v62  ;;  %v479_v33 = vsel %vm474_vm7, %v1802_v28, %v1807_v63 }
 0x315   :  { %632 = vmatpush.msra.mxu3 %v533_v4  ;;  %v527_v29 = vpop.permute.xlu1 %526  ;;  %v1845_v30 = vpop.permute.xlu2 %1844  ;;  %1690 = vmatmul.msk.f32.vlgmr.msra.gmra.mxu2 %vm541_vm13, %v2377_v62 }
 0x316   :  { %v1846_v23 = vunpack.i.l.bf16 %v1845_v30  ;;  %v1847_v10 = vunpack.i.h.bf16 %v1845_v30  ;;  %v534_v21 = vsel %vm528_vm5, %v1777_v6, %v527_v29  ;;  %v419_v44 = vpop.permute.xlu0 %418  ;;  %vm1053_vm5 = vcmask 916480  }
 0x317   :  { %633 = vmatpush.msra.mxu3 %v506_v32  ;;  %v426_v45 = vsel %vm420_vm9, %v1837_v54, %v419_v44 }
 0x318   :  { %v395_v55 = vsel %vm393_vm10, %v1797_v15, %v1846_v23  ;;  %v396_v58 = vsel %vm393_vm10, %v1846_v23, %v1841_v41  ;;  %v398_v15 = vsel %vm393_vm10, %v1842_v40, %v1847_v10 }
 0x319   :  { %634 = vmatpush.msra.mxu3 %v479_v33  ;;  %577 = vmatpush.msrb.mxu0 %v395_v55 }
 0x31a   :  { %597 = vmatpush.msrb.mxu1 %v396_v58 }
 0x31b   :  { %635 = vmatpush.msra.mxu3 %v452_v13 }
 0x31d   :  { %636 = vmatpush.msra.mxu3 %v425_v22  ;;  %v500_v11 = vpop.permute.xlu1 %499  ;;  %v1855_v18 = vpop.permute.xlu2 %1854 }
 0x31e   :  { %v1857_v28 = vunpack.i.h.bf16 %v1855_v18  ;;  %v1856_v35 = vunpack.i.l.bf16 %v1855_v18  ;;  %v507_v42 = vsel %vm501_vm6, %v1792_v19, %v500_v11  ;;  %v675_v48 = vpop.permute.xlu0 %674  ;;  %vm1124_vm6 = vcmask 990208  }
 0x31f   :  { %637 = vmatpush.msra.mxu3 %v398_v15 }
 0x320   :  { %v368_v2 = vsel %vm366_vm11, %v1812_v46, %v1856_v35  ;;  %v369_v12 = vsel %vm366_vm11, %v1856_v35, %v1851_v50  ;;  %v371_v31 = vsel %vm366_vm11, %v1852_v49, %v1857_v28 }
 0x321   :  { %578 = vmatpush.msrb.mxu0 %v368_v2  ;;  %598 = vmatpush.msrb.mxu1 %v369_v12  ;;  %v2031_v12 = vmov 90  }
 0x322   :  { %638 = vmatpush.msra.mxu3 %v371_v31  ;;  %1868 = vset.pattern.permute.xlu1 %v2031_v12 }
 0x325   :  { %v473_v27 = vpop.permute.xlu1 %472  ;;  %v1865_v36 = vpop.permute.xlu2 %1864 }
 0x326   :  { %v1867_v37 = vunpack.i.h.bf16 %v1865_v36  ;;  %v1866_v38 = vunpack.i.l.bf16 %v1865_v36  ;;  %v681_v53 = vpop.permute.xlu0 %680 }
 0x328   :  { %v344_v39 = vsel %vm342_vm12, %v1827_v56, %v1866_v38  ;;  %v345_v40 = vsel %vm342_vm12, %v1866_v38, %v1861_v8  ;;  %v347_v41 = vsel %vm342_vm12, %v1862_v7, %v1867_v37 }
 0x329   :  { %579 = vmatpush.msrb.mxu0 %v344_v39  ;;  %599 = vmatpush.msrb.mxu1 %v345_v40 }
 0x32a   :  { %639 = vmatpush.msra.mxu3 %v347_v41 }
 0x32b   :  { %580 = vmatpush.msrb.mxu0 %v2183_v24  ;;  %600 = vmatpush.msrb.mxu1 %v2187_v25  ;;  %v480_v24 = vsel %vm474_vm7, %v1807_v63, %v473_v27  ;;  %vm1126_vm7 = vcmask 932864  }
 0x32c   :  { %640 = vmatpush.msra.mxu3 %v2203_v34  ;;  %1688 = vmatmul.msk.f32.vlgmr.msrb.gmra.mxu0 %vm541_vm13, %v2377_v62 }
 0x32d   :  { %652 = vmatpush.msra.mxu0 %v534_v21  ;;  %1691 = vmatmul.msk.f32.vlgmr.msra.gmra.mxu3 %vm541_vm13, %v2377_v62  ;;  %v446_v43 = vpop.permute.xlu1 %445  ;;  %v392_v34 = vpop.permute.xlu2 %391 }
 0x32e   :  { %1689 = vmatmul.msk.f32.vlgmr.msrb.gmra.mxu1 %vm541_vm13, %v2377_v62  ;;  %v453_v25 = vsel %vm447_vm8, %v1822_v20, %v446_v43  ;;  %v399_v46 = vsel %vm393_vm10, %v1847_v10, %v392_v34 }
 0x32f   :  { %653 = vmatpush.msra.mxu0 %v507_v42 }
 0x331   :  { %654 = vmatpush.msra.mxu0 %v480_v24 }
 0x333   :  { %655 = vmatpush.msra.mxu0 %v453_v25 }
 0x335   :  { %656 = vmatpush.msra.mxu0 %v426_v45  ;;  %v673_v47 = vpop.permute.xlu1 %672  ;;  %v677_v49 = vpop.permute.xlu2 %676  ;;  %v2032_v45 = vmov 91  }
 0x336   :  { %v686_v50 = vsel %vm420_vm9, %v673_v47, %v675_v48  ;;  %v687_v51 = vsel %vm420_vm9, %v675_v48, %v677_v49 }
 0x337   :  { %657 = vmatpush.msra.mxu0 %v399_v46 }
 0x339   :  { %658 = vmatpush.msra.mxu0 %v1857_v28 }
 0x33b   :  { %659 = vmatpush.msra.mxu0 %v1867_v37 }
 0x33d   :  { %660 = vmatpush.msra.mxu0 %v2191_v26  ;;  %v679_v52 = vpop.permute.xlu1 %678  ;;  %v683_v9 = vpop.permute.xlu2 %682 }
 0x33e   :  { %1692 = vmatmul.msk.f32.vlgmr.msra.gmra.mxu0 %vm541_vm13, %v2377_v62  ;;  %v688_v26 = vsel %vm420_vm9, %v677_v49, %v679_v52  ;;  %v689_v6 = vsel %vm420_vm9, %v679_v52, %v681_v53  ;;  %v690_v19 = vsel %vm420_vm9, %v681_v53, %v683_v9 }
 0x345   :  { %v685_v20 = vpop.permute.xlu1 %684 }
 0x346   :  { %v691_v23 = vsel %vm420_vm9, %v683_v9, %v685_v20 }
 0x397   :  { %v2445_v57 = vpop.f32.mrf.mxu3 }
 0x398   :  { %v698_v59 = vmul.f32 %v686_v50, %v2445_v57  ;;  %v2458_v7 = vpop.f32.mrf.mxu2 }
 0x399   :  { %v701_v17 = vmul.f32 %v689_v6, %v2458_v7 }
 0x39a   :  { %v713_v56 = vmul.f32 %v698_v59, %v2445_v57 }
 0x39b   :  { %v716_v30 = vmul.f32 %v701_v17, %v2458_v7 }
 0x3a9   :  { %v2448_v60 = vpop.f32.mrf.mxu0 }
 0x3aa   :  { %v699_v61 = vmul.f32 %v687_v51, %v2448_v60 }
 0x3ab   :  { %v2452_v1 = vpop.f32.mrf.mxu1 }
 0x3ac   :  { %v714_v3 = vmul.f32 %v699_v61, %v2448_v60  ;;  %v700_v5 = vmul.f32 %v688_v26, %v2452_v1  ;;  %v704_v8 = vadd.f32 %v699_v61, %v698_v59 }
 0x3ae   :  { %v719_v14 = vadd.f32 %v714_v3, %v713_v56  ;;  %v715_v16 = vmul.f32 %v700_v5, %v2452_v1  ;;  %v705_v4 = vadd.f32 %v704_v8, %v700_v5 }
 0x3b0   :  { %v2463_v63 = vpop.f32.mrf.mxu3  ;;  %v720_v29 = vadd.f32 %v719_v14, %v715_v16  ;;  %v706_v54 = vadd.f32 %v705_v4, %v701_v17 }
 0x3b1   :  { %v702_v32 = vmul.f32 %v690_v19, %v2463_v63 }
 0x3b2   :  { %v721_v58 = vadd.f32 %v720_v29, %v716_v30 }
 0x3b3   :  { %v717_v33 = vmul.f32 %v702_v32, %v2463_v63  ;;  %v707_v13 = vadd.f32 %v706_v54, %v702_v32 }
 0x3b5   :  { %v722_v15 = vadd.f32 %v721_v58, %v717_v33 }
 0x3bb   :  { %v2469_v55 = vpop.f32.mrf.mxu0 }
 0x3bc   :  { %v703_v10 = vmul.f32 %v691_v23, %v2469_v55 }
 0x3be   :  { %v718_v22 = vmul.f32 %v703_v10, %v2469_v55  ;;  %v709_v11 = vsel %vm708_vm14, %v703_v10, 0.0 }
 0x3bf   :  { %v710_v18 = vadd.f32 %v709_v11, %v707_v13  ;;  %v2529_v13 = vld [vmem:[%s2971_s2 + $0x1f0] sm:$0xff] }
 0x3c0   :  { %v723_v28 = vsel %vm708_vm14, %v718_v22, 0.0  ;;  %v2534_v22 = vld [vmem:[%s2971_s2 + $0x1e0] sm:$0xff]  ;;  %1004 = vmatpush.msrb.mxu0 %v2529_v13 }
 0x3c1   :  { %711 = vadd.xlane.f32.xlu0 %v710_v18  ;;  %v724_v35 = vadd.f32 %v723_v28, %v722_v15  ;;  %v2542_v28 = vld [vmem:[%s2971_s2 + $0x1d0] sm:$0xff] }
 0x3c2   :  { %1005 = vmatpush.msrb.mxu0 %v2534_v22 }
 0x3c3   :  { %725 = vadd.xlane.f32.xlu2 %v724_v35 }
 0x3c4   :  { %1006 = vmatpush.msrb.mxu0 %v2542_v28 }
 0x434   :  { %v712_v2 = vpop.xlane.xlu0 %711 }
 0x435   :  { %v727_v31 = vmul.f32 0.0015432099, %v712_v2 }
 0x436   :  { %v726_v27 = vpop.xlane.xlu2 %725 }
 0x437   :  { %v729_v36 = vmul.f32 %v727_v31, %v727_v31  ;;  %v728_v37 = vmul.f32 0.0015432099, %v726_v27 }
 0x439   :  { %v730_v38 = vsub.f32 %v728_v37, %v729_v36  ;;  %v2556_v36 = vld [vmem:[%s2971_s2 + $0x1b0] sm:$0xff] }
 0x43b   :  { %v731_v39 = vadd.f32 1e-05, %v730_v38 }
 0x43d   :  { %2006 = vrsqrt.f32 %v731_v39  ;;  %vm738_vm0 = vweird.f32 %v731_v39 }
 0x443   :  { %v2007_v40 = vpop.eup %2006 }
 0x444   :  { %v733_v41 = vmul.f32 %v2007_v40, %v731_v39  ;;  %vm739_vm15 = vweird.f32 %v2007_v40 }
 0x445   :  { %vm740_vm2 = vmor %vm738_vm0, %vm739_vm15  ;;  %vm1238_vm15 = vcmask 850944   ;;  %vm1230_vm0 = vcmask 859136  }
 0x446   :  { %v734_v21 = vmul.f32 %v2007_v40, %v733_v41 }
 0x448   :  { %v735_v42 = vmul.f32 0.5, %v734_v21  ;;  %v2572_v21 = vld [vmem:[%s2971_s2 + $0x190] sm:$0xff] }
 0x44a   :  { %v736_v43 = vsub.f32 1.5, %v735_v42 }
 0x44c   :  { %v737_v24 = vmul.f32 %v2007_v40, %v736_v43 }
 0x44e   :  { %v741_v44 = vsel %vm740_vm2, %v2007_v40, %v737_v24  ;;  %v2564_v40 = vld [vmem:[%s2971_s2 + $0x1a0] sm:$0xff]  ;;  %vm1215_vm2 = vcmask 941056  }
 0x44f   :  { %v742_v25 = vmul.f32 %v741_v44, %v2073_v0  ;;  %v2581_v44 = vld [vmem:[%s2971_s2 + $0x180] sm:$0xff] }
 0x451   :  { %v743_v34 = vmul.f32 %v742_v25, %v727_v31  ;;  %v2549_v31 = vld [vmem:[%s2971_s2 + $0x1c0] sm:$0xff] }
 0x452   :  { %1007 = vmatpush.msrb.mxu0 %v2549_v31 }
 0x453   :  { %745 = vrot.lane.b32.xlu1 %v743_v34, %s2021_s29 }
 0x454   :  { %1008 = vmatpush.msrb.mxu0 %v2556_v36 }
 0x456   :  { %1009 = vmatpush.msrb.mxu0 %v2564_v40 }
 0x458   :  { %1010 = vmatpush.msrb.mxu0 %v2572_v21 }
 0x45a   :  { %1011 = vmatpush.msrb.mxu0 %v2581_v44 }
 0x45b   :  { %751 = vperm.xlu1 %1868, %v742_v25  }
 0x463   :  { %1869 = vset.pattern.permute.xlu1 %v2032_v45  ;;  %v2588_v45 = vld [vmem:[%s2971_s2 + $0x170] sm:$0xff] }
 0x464   :  { %1012 = vmatpush.msrb.mxu0 %v2588_v45 }
 0x4c5   :  { %v746_v46 = vpop.permute.xlu1 %745 }
 0x4c6   :  { %v748_v47 = vsub.f32 %v2073_v0, %v746_v46 }
 0x4c8   :  { %762 = vperm.xlu1 %1869, %v748_v47  }
 0x4cd   :  { %v752_v48 = vpop.permute.xlu1 %751 }
 0x4ce   :  { %v754_v49 = vmul.f32 %v752_v48, %v2445_v57  ;;  %v755_v50 = vmul.f32 %v752_v48, %v2448_v60  ;;  %v756_v51 = vmul.f32 %v752_v48, %v2452_v1  ;;  %v757_v52 = vmul.f32 %v752_v48, %v2458_v7 }
 0x4cf   :  { %v758_v6 = vmul.f32 %v752_v48, %v2463_v63  ;;  %v759_v9 = vmul.f32 %v752_v48, %v2469_v55  ;;  %v2595_v48 = vld [vmem:[%s2971_s2 + $0x160] sm:$0xff] }
 0x4d0   :  { %852 = vrot.lane.b32.xlu1 %v2073_v0, %s2033_s27  ;;  %1013 = vmatpush.msrb.mxu0 %v2595_v48 }
 0x53a   :  { %v763_v59 = vpop.permute.xlu1 %762 }
 0x53b   :  { %v2482_v61 = vadd.f32 %v763_v59, %v754_v49  ;;  %v766_v26 = vadd.f32 %v763_v59, %v755_v50  ;;  %v2484_v53 = vadd.f32 %v763_v59, %v756_v51  ;;  %v2486_v56 = vadd.f32 %v763_v59, %v757_v52  ;;  %v2604_v51 = vld [vmem:[%s2971_s2 + $0x150] sm:$0xff]  ;;  %v2609_v52 = vld [vmem:[%s2971_s2 + $0x2a0] sm:$0x1] }
 0x53c   :  { %v769_v7 = vadd.f32 %v763_v59, %v758_v6  ;;  %v770_v14 = vadd.f32 %v763_v59, %v759_v9  ;;  %1014 = vmatpush.msrb.mxu0 %v2604_v51  ;;  %1699 = vmatpush.msk.msrb.mxu3 %vm980_vm3, %v2609_v52  ;;  %v2661_v6 = vld [vmem:[%s2971_s2 + $0x110] sm:$0xff] }
 0x53d   :  { %v772_v3 = vmax.f32 %v766_v26, 0.0  ;;  %v773_v0 = vmax.f32 %v2484_v53, 0.0  ;;  %v771_v5 = vmax.f32 %v2482_v61, 0.0  ;;  %v774_v57 = vmax.f32 %v2486_v56, 0.0  ;;  %v2618_v61 = vld [vmem:[%s2971_s2 + $0x140] sm:$0xff]  ;;  %v2626_v26 = vld [vmem:[%s2971_s2 + $0x290] sm:$0xff] }
 0x53e   :  { %v2501_v8 = vmax.f32 %v769_v7, 0.0  ;;  %v2508_v16 = vmax.f32 %v770_v14, 0.0  ;;  %v2633_v53 = vld [vmem:[%s2971_s2 + $0x130] sm:$0xff]  ;;  %1015 = vmatpush.msrb.mxu0 %v2618_v61  ;;  %1030 = vmatpush.msrb.mxu3 %v2626_v26  ;;  %v45_v14 = vld [vmem:[%s2971_s2 + $0xe0] sm:$0xff] }
 0x53f   :  { %v1880_v60 = vpack.i.bf16 %v773_v0, %v772_v3  ;;  %v1890_v1 = vpack.i.bf16 %v774_v57, %v771_v5  ;;  %v46_v9 = vld [vmem:[%s2971_s2 + $0xf0] sm:$0xff] }
 0x540   :  { %1016 = vmatpush.msrb.mxu0 %v2633_v53 }
 0x541   :  { %1881 = vrot.lane.b32.xlu0 %v1880_v60, %s2030_s24  ;;  %1871 = vrot.lane.b32.xlu1 %v1880_v60, %s2027_s19 }
 0x542   :  { %1891 = vrot.lane.b32.xlu2 %v1890_v1, %s2028_s20  ;;  %v2521_v17 = vpop.permute.xlu1 %852 }
 0x549   :  { %1876 = vrot.lane.b32.xlu1 %v1880_v60, %s2028_s20  ;;  %1896 = vrot.lane.b32.xlu0 %v1890_v1, %s2030_s24 }
 0x54a   :  { %791 = vrot.lane.b32.xlu2 %v2501_v8, %s2030_s24 }
 0x551   :  { %839 = vrot.lane.b32.xlu0 %v2508_v16, %s2027_s19  ;;  %1886 = vrot.lane.b32.xlu1 %v1890_v1, %s2027_s19  ;;  %v2655_v1 = vld [vmem:[%s2971_s2 + $0x270] sm:$0xff] }
 0x552   :  { %793 = vrot.lane.b32.xlu2 %v2508_v16, %s2030_s24 }
 0x559   :  { %837 = vrot.lane.b32.xlu1 %v2501_v8, %s2027_s19 }
 0x561   :  { %814 = vrot.lane.b32.xlu1 %v2501_v8, %s2028_s20 }
 0x569   :  { %816 = vrot.lane.b32.xlu1 %v2508_v16, %s2028_s20 }
 0x59c   :  { %v1892_v10 = vpop.permute.xlu2 %1891 }
 0x59d   :  { %v1893_v35 = vunpack.i.l.bf16 %v1892_v10  ;;  %v1894_v42 = vunpack.i.h.bf16 %v1892_v10  ;;  %v68_v10 = vld [vmem:[%s2971_s2 + $0x250] sm:$0xff] }
 0x5a4   :  { %v792_v34 = vpop.permute.xlu2 %791 }
 0x5b3   :  { %v1872_v19 = vpop.permute.xlu1 %1871  ;;  %v1882_v29 = vpop.permute.xlu0 %1881 }
 0x5b4   :  { %v1874_v63 = vunpack.i.h.bf16 %v1872_v19  ;;  %v1873_v4 = vunpack.i.l.bf16 %v1872_v19  ;;  %v1884_v32 = vunpack.i.h.bf16 %v1882_v29  ;;  %v1883_v23 = vunpack.i.l.bf16 %v1882_v29  ;;  %v41_v19 = vld [vmem:[%s2971_s2 + $0xa0] sm:$0xff] }
 0x5b5   :  { %v2709_v29 = vld [vmem:[%s2971_s2 + $0x60] sm:$0xff] }
 0x5b6   :  { %v842_v20 = vsel %vm420_vm9, %v1873_v4, %v1874_v63  ;;  %v796_v58 = vsel %vm342_vm12, %v1883_v23, %v1884_v32 }
 0x5b7   :  { %888 = vmatpush.msrb.mxu2 %v842_v20  ;;  %v2702_v20 = vld [vmem:[%s2971_s2 + $0x70] sm:$0xff] }
 0x5bb   :  { %v1877_v30 = vpop.permute.xlu1 %1876  ;;  %v1897_v11 = vpop.permute.xlu0 %1896 }
 0x5bc   :  { %v1879_v54 = vunpack.i.h.bf16 %v1877_v30  ;;  %v1878_v33 = vunpack.i.l.bf16 %v1877_v30  ;;  %v1898_v2 = vunpack.i.l.bf16 %v1897_v11  ;;  %v1899_v43 = vunpack.i.h.bf16 %v1897_v11  ;;  %v2716_v30 = vld [vmem:[%s2971_s2 + $0x50] sm:$0xff]  ;;  %v2761_v11 = vld [vmem:[%s2971_s2] sm:$0xff] }
 0x5be   :  { %v819_v55 = vsel %vm393_vm10, %v1878_v33, %v1879_v54  ;;  %v818_v27 = vsel %vm393_vm10, %v1893_v35, %v1878_v33  ;;  %v795_v38 = vsel %vm342_vm12, %v1898_v2, %v1883_v23  ;;  %v820_v25 = vsel %vm393_vm10, %v1879_v54, %v1894_v42  ;;  %v2730_v23 = vld [vmem:[%s2971_s2 + $0x30] sm:$0xff]  ;;  %v2739_v54 = vld [vmem:[%s2971_s2 + $0x20] sm:$0xff] }
 0x5bf   :  { %889 = vmatpush.msrb.mxu2 %v819_v55  ;;  %v797_v46 = vsel %vm342_vm12, %v1884_v32, %v1899_v43  ;;  %v798_v59 = vsel %vm342_vm12, %v1899_v43, %v792_v34  ;;  %v2723_v32 = vld [vmem:[%s2971_s2 + $0x40] sm:$0xff]  ;;  %v64_v2 = vld [vmem:[%s2971_s2 + $0x210] sm:$0xff] }
 0x5c0   :  { %v47_v33 = vld [vmem:[%s2971_s2 + $0x100] sm:$0xff] }
 0x5c1   :  { %890 = vmatpush.msrb.mxu2 %v796_v58  ;;  %v69_v55 = vld [vmem:[%s2971_s2 + $0x260] sm:$0xff]  ;;  %v2751_v58 = vld [vmem:[%s2971_s2 + $0x10] sm:$0xff] }
 0x5c2   :  { %v65_v35 = vld [vmem:[%s2971_s2 + $0x220] sm:$0xff] }
 0x5c3   :  { %v1887_v18 = vpop.permute.xlu1 %1886  ;;  %891 = vmatpush.msrb.mxu2 %v772_v3  ;;  %v840_v50 = vpop.permute.xlu0 %839 }
 0x5c4   :  { %v1888_v15 = vunpack.i.l.bf16 %v1887_v18  ;;  %1694 = vmatmul.msk.f32.vlgmr.msrb.gmra.mxu2 %vm236_vm1, %v2521_v17  ;;  %v1889_v37 = vunpack.i.h.bf16 %v1887_v18  ;;  %v67_v18 = vld [vmem:[%s2971_s2 + $0x240] sm:$0xff] }
 0x5c6   :  { %v841_v12 = vsel %vm420_vm9, %v1888_v15, %v1873_v4  ;;  %v843_v24 = vsel %vm420_vm9, %v1874_v63, %v1889_v37  ;;  %v40_v63 = vld [vmem:[%s2971_s2 + $0x90] sm:$0xff]  ;;  %v2697_v4 = vld [vmem:[%s2971_s2 + $0x80] sm:$0xff] }
 0x5c7   :  { %868 = vmatpush.msra.mxu1 %v841_v12  ;;  %v66_v15 = vld [vmem:[%s2971_s2 + $0x230] sm:$0xff]  ;;  %v63_v12 = vld [vmem:[%s2971_s2 + $0x200] sm:$0xff] }
 0x5c9   :  { %869 = vmatpush.msra.mxu1 %v818_v27 }
 0x5cb   :  { %v838_v39 = vpop.permute.xlu1 %837  ;;  %870 = vmatpush.msra.mxu1 %v795_v38 }
 0x5cc   :  { %v844_v41 = vsel %vm420_vm9, %v1889_v37, %v838_v39  ;;  %v845_v3 = vsel %vm420_vm9, %v838_v39, %v840_v50 }
 0x5cd   :  { %871 = vmatpush.msra.mxu1 %v771_v5  ;;  %928 = vmatpush.msra.mxu2 %v844_v41  ;;  %v794_v5 = vpop.permute.xlu2 %793 }
 0x5ce   :  { %1693 = vmatmul.msk.f32.vlgmr.msra.gmra.mxu1 %vm236_vm1, %v2521_v17  ;;  %v799_v7 = vsel %vm342_vm12, %v792_v34, %v794_v5 }
 0x5cf   :  { %908 = vmatpush.msrb.mxu1 %v843_v24 }
 0x5d1   :  { %909 = vmatpush.msrb.mxu1 %v820_v25 }
 0x5d3   :  { %910 = vmatpush.msrb.mxu1 %v797_v46  ;;  %v815_v47 = vpop.permute.xlu1 %814 }
 0x5d4   :  { %v821_v49 = vsel %vm393_vm10, %v1894_v42, %v815_v47 }
 0x5d5   :  { %911 = vmatpush.msrb.mxu1 %v773_v0  ;;  %929 = vmatpush.msra.mxu2 %v821_v49  ;;  %v2642_v0 = vld [vmem:[%s2971_s2 + $0x280] sm:$0xff] }
 0x5d6   :  { %1695 = vmatmul.msk.f32.vlgmr.msrb.gmra.mxu1 %vm236_vm1, %v2521_v17  ;;  %1031 = vmatpush.msrb.mxu3 %v2642_v0 }
 0x5d7   :  { %968 = vmatpush.msra.mxu1 %v840_v50  ;;  %930 = vmatpush.msra.mxu2 %v798_v59 }
 0x5d8   :  { %1032 = vmatpush.msrb.mxu3 %v2655_v1 }
 0x5d9   :  { %931 = vmatpush.msra.mxu2 %v774_v57  ;;  %v2648_v57 = vld [vmem:[%s2971_s2 + $0x120] sm:$0xff] }
 0x5da   :  { %1696 = vmatmul.msk.f32.vlgmr.msra.gmra.mxu2 %vm236_vm1, %v2521_v17  ;;  %1017 = vmatpush.msrb.mxu0 %v2648_v57 }
 0x5db   :  { %948 = vmatpush.msrb.mxu2 %v845_v3  ;;  %v817_v56 = vpop.permute.xlu1 %816  ;;  %1033 = vmatpush.msrb.mxu3 %v69_v55  ;;  %v2035_v3 = vmov 92  }
 0x5dc   :  { %969 = vmatpush.msra.mxu1 %v817_v56  ;;  %v822_v60 = vsel %vm393_vm10, %v815_v47, %v817_v56  ;;  %1018 = vmatpush.msrb.mxu0 %v2661_v6 }
 0x5dd   :  { %949 = vmatpush.msrb.mxu2 %v822_v60  ;;  %1034 = vmatpush.msrb.mxu3 %v68_v10 }
 0x5de   :  { %970 = vmatpush.msra.mxu1 %v794_v5  ;;  %1019 = vmatpush.msrb.mxu0 %v47_v33 }
 0x5df   :  { %950 = vmatpush.msrb.mxu2 %v799_v7  ;;  %1035 = vmatpush.msrb.mxu3 %v67_v18 }
 0x5e0   :  { %971 = vmatpush.msra.mxu1 %v2508_v16  ;;  %v44_v16 = vld [vmem:[%s2971_s2 + $0xd0] sm:$0xff]  ;;  %1900 = vset.pattern.permute.xlu0 %v2035_v3 }
 0x5e1   :  { %951 = vmatpush.msrb.mxu2 %v2501_v8  ;;  %1698 = vmatmul.msk.f32.vlgmr.msra.gmra.mxu1 %vm236_vm1, %v2521_v17  ;;  %v43_v8 = vld [vmem:[%s2971_s2 + $0xc0] sm:$0xff] }
 0x5e2   :  { %1697 = vmatmul.msk.f32.vlgmr.msrb.gmra.mxu2 %vm236_vm1, %v2521_v17  ;;  %1060 = vmatpush.msrb.mxu1 %v46_v9  ;;  %v42_v17 = vld [vmem:[%s2971_s2 + $0xb0] sm:$0xff] }
 0x5e3   :  { %984 = vmatpush.msra.mxu2 %v46_v9  ;;  %1036 = vmatpush.msrb.mxu3 %v66_v15 }
 0x5e4   :  { %1061 = vmatpush.msrb.mxu1 %v45_v14 }
 0x5e5   :  { %985 = vmatpush.msra.mxu2 %v45_v14  ;;  %1037 = vmatpush.msrb.mxu3 %v65_v35 }
 0x5e6   :  { %1062 = vmatpush.msrb.mxu1 %v44_v16 }
 0x5e7   :  { %986 = vmatpush.msra.mxu2 %v44_v16  ;;  %1038 = vmatpush.msrb.mxu3 %v64_v2 }
 0x5e8   :  { %1063 = vmatpush.msrb.mxu1 %v43_v8 }
 0x5e9   :  { %987 = vmatpush.msra.mxu2 %v43_v8  ;;  %1039 = vmatpush.msrb.mxu3 %v63_v12 }
 0x5ea   :  { %1064 = vmatpush.msrb.mxu1 %v42_v17 }
 0x5eb   :  { %988 = vmatpush.msra.mxu2 %v42_v17  ;;  %1080 = vmatpush.msra.mxu3 %v2529_v13 }
 0x5ec   :  { %1065 = vmatpush.msrb.mxu1 %v41_v19 }
 0x5ed   :  { %989 = vmatpush.msra.mxu2 %v41_v19  ;;  %1081 = vmatpush.msra.mxu3 %v2534_v22  ;;  %v2807_v19 = vld [vmem:[%s2969_s1 + $0x8] sm:$0xff] }
 0x5ee   :  { %1066 = vmatpush.msrb.mxu1 %v40_v63 }
 0x5ef   :  { %990 = vmatpush.msra.mxu2 %v40_v63  ;;  %1082 = vmatpush.msra.mxu3 %v2542_v28 }
 0x5f0   :  { %1067 = vmatpush.msrb.mxu1 %v2697_v4 }
 0x5f1   :  { %991 = vmatpush.msra.mxu2 %v2697_v4  ;;  %1083 = vmatpush.msra.mxu3 %v2549_v31 }
 0x5f2   :  { %1068 = vmatpush.msrb.mxu1 %v2702_v20 }
 0x5f3   :  { %992 = vmatpush.msra.mxu2 %v2702_v20  ;;  %1084 = vmatpush.msra.mxu3 %v2556_v36 }
 0x5f4   :  { %1069 = vmatpush.msrb.mxu1 %v2709_v29 }
 0x5f5   :  { %993 = vmatpush.msra.mxu2 %v2709_v29  ;;  %1085 = vmatpush.msra.mxu3 %v2564_v40 }
 0x5f6   :  { %1070 = vmatpush.msrb.mxu1 %v2716_v30 }
 0x5f7   :  { %994 = vmatpush.msra.mxu2 %v2716_v30  ;;  %1086 = vmatpush.msra.mxu3 %v2572_v21 }
 0x5f8   :  { %1071 = vmatpush.msrb.mxu1 %v2723_v32 }
 0x5f9   :  { %995 = vmatpush.msra.mxu2 %v2723_v32  ;;  %1087 = vmatpush.msra.mxu3 %v2581_v44 }
 0x5fa   :  { %1072 = vmatpush.msrb.mxu1 %v2730_v23 }
 0x5fb   :  { %996 = vmatpush.msra.mxu2 %v2730_v23  ;;  %1088 = vmatpush.msra.mxu3 %v2588_v45 }
 0x5fc   :  { %1073 = vmatpush.msrb.mxu1 %v2739_v54 }
 0x5fd   :  { %997 = vmatpush.msra.mxu2 %v2739_v54  ;;  %1089 = vmatpush.msra.mxu3 %v2595_v48 }
 0x5fe   :  { %1074 = vmatpush.msrb.mxu1 %v2751_v58 }
 0x5ff   :  { %998 = vmatpush.msra.mxu2 %v2751_v58  ;;  %1090 = vmatpush.msra.mxu3 %v2604_v51 }
 0x600   :  { %1075 = vmatpush.msrb.mxu1 %v2761_v11 }
 0x601   :  { %999 = vmatpush.msra.mxu2 %v2761_v11  ;;  %1091 = vmatpush.msra.mxu3 %v2618_v61 }
 0x603   :  { %1701 = vmatpush.msk.msrb.mxu2 %vm980_vm3, %v2609_v52  ;;  %1092 = vmatpush.msra.mxu3 %v2633_v53 }
 0x605   :  { %1106 = vmatpush.msrb.mxu2 %v2626_v26  ;;  %1093 = vmatpush.msra.mxu3 %v2648_v57 }
 0x607   :  { %1107 = vmatpush.msrb.mxu2 %v2642_v0  ;;  %1094 = vmatpush.msra.mxu3 %v2661_v6 }
 0x609   :  { %1108 = vmatpush.msrb.mxu2 %v2655_v1  ;;  %1095 = vmatpush.msra.mxu3 %v47_v33 }
 0x60b   :  { %1109 = vmatpush.msrb.mxu2 %v69_v55  ;;  %v2036_v55 = vmov 93  }
 0x60d   :  { %1110 = vmatpush.msrb.mxu2 %v68_v10 }
 0x60f   :  { %1111 = vmatpush.msrb.mxu2 %v67_v18 }
 0x611   :  { %1112 = vmatpush.msrb.mxu2 %v66_v15 }
 0x613   :  { %1113 = vmatpush.msrb.mxu2 %v65_v35 }
 0x615   :  { %1114 = vmatpush.msrb.mxu2 %v64_v2 }
 0x617   :  { %1115 = vmatpush.msrb.mxu2 %v63_v12 }
 0x647   :  { %v893_v13 = vpop.f32.mrf.mxu2 }
 0x648   :  { %1020 = vmatmul.f32.vlgmr.msrb.gmra.mxu0 %v893_v13  ;;  %v2017_v13 = vld [vmem:[%s2970_s0 + $0x38] sm:$0xff] }
 0x64b   :  { %v873_v22 = vpop.f32.mrf.mxu1 }
 0x64c   :  { %1000 = vmatmul.f32.vlgmr.msra.gmra.mxu2 %v873_v22  ;;  %v1175_v22 = vperm.slane %v2017_v13, 1 }
 0x653   :  { %v913_v28 = vpop.f32.mrf.mxu1 }
 0x654   :  { %1700 = vmatmul.msk.f32.vlgmr.msrb.gmra.mxu3 %vm976_vm4, %v913_v28  ;;  %v2018_v28 = vld [vmem:[%s2970_s0 + $0x40] sm:$0xff]  ;;  %s2040_s0 = smov 117  }
 0x65d   :  { %v933_v31 = vpop.f32.mrf.mxu2 }
 0x65e   :  { %1047 = vrot.lane.b32.xlu2 %v933_v31, %s2033_s27  ;;  %v973_v27 = vpop.f32.mrf.mxu1  ;;  %v1176_v31 = vperm.slane %v2018_v28, 1 }
 0x65f   :  { %1051 = vrot.lane.b32.xlu1 %v973_v27, %s2033_s27 }
 0x665   :  { %v953_v36 = vpop.f32.mrf.mxu2 }
 0x666   :  { %1049 = vrot.lane.b32.xlu0 %v953_v36, %s2033_s27 }
 0x6b8   :  { %v1048_v38 = vpop.permute.xlu2 %1047 }
 0x6c5   :  { %v1021_v45 = vpop.f32.mrf.mxu0 }
 0x6cf   :  { %v1001_v42 = vpop.f32.mrf.mxu2 }
 0x6d0   :  { %v1022_v46 = vadd.f32 %v1021_v45, %v1001_v42 }
 0x6d1   :  { %v1052_v37 = vpop.permute.xlu1 %1051 }
 0x6d2   :  { %1702 = vmatmul.msk.f32.vlgmr.msrb.gmra.mxu2 %vm976_vm4, %v1052_v37  ;;  %vm1207_vm4 = vcmask 949248  }
 0x6d7   :  { %v1041_v21 = vpop.f32.mrf.mxu3 }
 0x6d8   :  { %v1050_v39 = vpop.permute.xlu0 %1049  ;;  %v1042_v47 = vadd.f32 %v1041_v21, %v1022_v46 }
 0x6d9   :  { %v1054_v40 = vsel %vm1053_vm5, %v1048_v38, %v1050_v39  ;;  %v1055_v41 = vsel %vm1053_vm5, %v1050_v39, %v1052_v37  ;;  %vm1199_vm5 = vcmask 957440  }
 0x6da   :  { %1076 = vmatmul.f32.vlgmr.msrb.gmra.mxu1 %v1054_v40  ;;  %1096 = vmatmul.f32.vlgmr.msra.gmra.mxu3 %v1055_v41 }
 0x755   :  { %v1117_v25 = vpop.f32.mrf.mxu2 }
 0x757   :  { %v1077_v43 = vpop.f32.mrf.mxu1 }
 0x75d   :  { %v1097_v24 = vpop.f32.mrf.mxu3 }
 0x75e   :  { %v1098_v44 = vadd.f32 %v1097_v24, %v1077_v43 }
 0x760   :  { %v1118_v34 = vadd.f32 %v1117_v25, %v1098_v44 }
 0x762   :  { %1121 = vrot.lane.b32.xlu0 %v1118_v34, %s2034_s25 }
 0x7d4   :  { %v1122_v48 = vpop.permute.xlu0 %1121 }
 0x7d5   :  { %v1125_v49 = vsel %vm1124_vm6, %v1042_v47, %v1122_v48  ;;  %v1127_v50 = vsel %vm1126_vm7, %v1122_v48, 0.0  ;;  %v1132_v51 = vmul.f32 %v1122_v48, %v1122_v48 }
 0x7d6   :  { %v1128_v52 = vadd.f32 %v1127_v50, %v1125_v49  ;;  %v1131_v59 = vmul.f32 %v1125_v49, %v1125_v49 }
 0x7d7   :  { %v1133_v61 = vsel %vm1126_vm7, %v1132_v51, 0.0 }
 0x7d8   :  { %1129 = vadd.xlane.f32.xlu1 %v1128_v52  ;;  %v1134_v26 = vadd.f32 %v1133_v61, %v1131_v59 }
 0x7da   :  { %1135 = vadd.xlane.f32.xlu2 %v1134_v26 }
 0x84b   :  { %v1130_v53 = vpop.xlane.xlu1 %1129 }
 0x84c   :  { %v1137_v0 = vmul.f32 0.0061728396, %v1130_v53 }
 0x84d   :  { %v1136_v5 = vpop.xlane.xlu2 %1135 }
 0x84e   :  { %v1139_v56 = vmul.f32 %v1137_v0, %v1137_v0  ;;  %v1138_v57 = vmul.f32 0.0061728396, %v1136_v5 }
 0x850   :  { %v1140_v60 = vsub.f32 %v1138_v57, %v1139_v56 }
 0x852   :  { %v1141_v1 = vadd.f32 1e-05, %v1140_v60 }
 0x854   :  { %2008 = vrsqrt.f32 %v1141_v1  ;;  %vm1148_vm10 = vweird.f32 %v1141_v1 }
 0x85a   :  { %v2009_v6 = vpop.eup %2008 }
 0x85b   :  { %v1143_v7 = vmul.f32 %v2009_v6, %v1141_v1  ;;  %vm1149_vm9 = vweird.f32 %v2009_v6 }
 0x85c   :  { %vm1150_vm14 = vmor %vm1148_vm10, %vm1149_vm9  ;;  %vm1488_vm9 = vcmask 56320  }
 0x85d   :  { %v1144_v9 = vmul.f32 %v2009_v6, %v1143_v7 }
 0x85f   :  { %v1145_v14 = vmul.f32 0.5, %v1144_v9 }
 0x861   :  { %v1146_v16 = vsub.f32 1.5, %v1145_v14 }
 0x863   :  { %v1147_v8 = vmul.f32 %v2009_v6, %v1146_v16 }
 0x865   :  { %v1151_v17 = vsel %vm1150_vm14, %v2009_v6, %v1147_v8 }
 0x866   :  { %v1152_v63 = vmul.f32 %v2807_v19, %v1151_v17 }
 0x868   :  { %v1153_v33 = vmul.f32 %v1152_v63, %v1137_v0 }
 0x86a   :  { %1155 = vrot.lane.b32.xlu0 %v1153_v33, %s2021_s29 }
 0x872   :  { %1161 = vperm.xlu0 %1900, %v1152_v63  }
 0x87a   :  { %1901 = vset.pattern.permute.xlu0 %v2036_v55 }
 0x8dc   :  { %v1156_v10 = vpop.permute.xlu0 %1155 }
 0x8dd   :  { %v1158_v18 = vsub.f32 %v2807_v19, %v1156_v10 }
 0x8df   :  { %1168 = vperm.xlu0 %1901, %v1158_v18  }
 0x8e4   :  { %v1162_v15 = vpop.permute.xlu0 %1161 }
 0x8e5   :  { %v1164_v35 = vmul.f32 %v1162_v15, %v1125_v49  ;;  %v1165_v2 = vmul.f32 %v1162_v15, %v1122_v48 }
 0x951   :  { %v1169_v12 = vpop.permute.xlu0 %1168 }
 0x952   :  { %v1171_v27 = vadd.f32 %v1169_v12, %v1164_v35  ;;  %v1172_v36 = vadd.f32 %v1169_v12, %v1165_v2 }
 0x954   :  { %v1173_v37 = vmax.f32 %v1171_v27, 0.0  ;;  %v1174_v38 = vmax.f32 %v1172_v36, 0.0 }
 0x956   :  { %v2818_v39 = vmul.f32 %v1175_v22, %v1173_v37  ;;  %v2820_v40 = vmul.f32 %v1176_v31, %v1174_v38  ;;  %v2043_v37 = vmov 94  }
 0x957   :  { %1942 = vset.pattern.permute.xlu2 %v2043_v37 }
 0x958   :  { %v1912_v41 = vpack.i.bf16 %v2820_v40, %v2818_v39 }
 0x95a   :  { %1913 = vrot.lane.b32.xlu0 %v1912_v41, %s2023_s15  ;;  %1908 = vrot.lane.b32.xlu1 %v1912_v41, %s2037_s6  ;;  %s2045_s15 = smov 80  }
 0x95b   :  { %1903 = vrot.lane.b32.xlu2 %v1912_v41, %s2038_s7 }
 0x962   :  { %1918 = vrot.lane.b32.xlu0 %v1912_v41, %s2039_s8  ;;  %1938 = vrot.lane.b32.xlu1 %v1912_v41, %s2030_s24 }
 0x963   :  { %1928 = vrot.lane.b32.xlu2 %v1912_v41, %s2040_s0 }
 0x96a   :  { %1923 = vrot.lane.b32.xlu0 %v1912_v41, %s2041_s9  ;;  %1292 = vrot.lane.b32.xlu1 %v1175_v22, %s2041_s9 }
 0x96b   :  { %1242 = vrot.lane.b32.xlu2 %v2377_v62, %s2042_s10 }
 0x972   :  { %1933 = vrot.lane.b32.xlu0 %v1912_v41, %s2029_s21 }
 0x973   :  { %1294 = vrot.lane.b32.xlu2 %v1176_v31, %s2041_s9 }
 0x97a   :  { %1244 = vrot.lane.b32.xlu0 %v2807_v19, %s2042_s10 }
 0x9b5   :  { %v1904_v21 = vpop.permute.xlu2 %1903 }
 0x9b6   :  { %v1906_v42 = vunpack.i.h.bf16 %v1904_v21  ;;  %v1905_v43 = vunpack.i.l.bf16 %v1904_v21 }
 0x9b8   :  { %1277 = vmatpush.msra.mxu1 %v1906_v42  ;;  %v1239_v24 = vsel %vm1238_vm15, %v1905_v43, %v1906_v42 }
 0x9b9   :  { %1257 = vmatpush.msra.mxu0 %v1239_v24 }
 0x9bd   :  { %v1929_v59 = vpop.permute.xlu2 %1928 }
 0x9be   :  { %v1931_v26 = vunpack.i.h.bf16 %v1929_v59  ;;  %v1930_v53 = vunpack.i.l.bf16 %v1929_v59 }
 0x9c0   :  { %v1200_v56 = vsel %vm1199_vm5, %v1930_v53, %v1931_v26 }
 0x9c5   :  { %v1243_v8 = vpop.permute.xlu2 %1242 }
 0x9cc   :  { %v1914_v44 = vpop.permute.xlu0 %1913  ;;  %v1909_v25 = vpop.permute.xlu1 %1908 }
 0x9cd   :  { %v1916_v34 = vunpack.i.h.bf16 %v1914_v44  ;;  %v1915_v45 = vunpack.i.l.bf16 %v1914_v44  ;;  %v1911_v46 = vunpack.i.h.bf16 %v1909_v25  ;;  %v1910_v62 = vunpack.i.l.bf16 %v1909_v25  ;;  %v1295_v55 = vpop.permute.xlu2 %1294 }
 0x9cf   :  { %1278 = vmatpush.msra.mxu1 %v1911_v46  ;;  %v1231_v47 = vsel %vm1230_vm0, %v1910_v62, %v1911_v46  ;;  %v1223_v48 = vsel %vm447_vm8, %v1915_v45, %v1916_v34  ;;  %vm1246_vm8 = vcmask 457728  }
 0x9d0   :  { %1258 = vmatpush.msra.mxu0 %v1231_v47 }
 0x9d1   :  { %1279 = vmatpush.msra.mxu1 %v1916_v34 }
 0x9d2   :  { %1259 = vmatpush.msra.mxu0 %v1223_v48  ;;  %v2044_v48 = vmov 95  }
 0x9d4   :  { %v1919_v49 = vpop.permute.xlu0 %1918  ;;  %v1939_v57 = vpop.permute.xlu1 %1938 }
 0x9d5   :  { %v1921_v50 = vunpack.i.h.bf16 %v1919_v49  ;;  %v1920_v51 = vunpack.i.l.bf16 %v1919_v49  ;;  %v1941_v1 = vunpack.i.h.bf16 %v1939_v57  ;;  %v1940_v6 = vunpack.i.l.bf16 %v1939_v57  ;;  %v83_v57 = vld [vmem:[%s2971_s2 + $0x90] sm:$0x1] }
 0x9d7   :  { %1280 = vmatpush.msra.mxu1 %v1921_v50  ;;  %v1216_v52 = vsel %vm1215_vm2, %v1920_v51, %v1921_v50  ;;  %v1185_v16 = vsel %vm342_vm12, %v1940_v6, %v1941_v1 }
 0x9d8   :  { %1260 = vmatpush.msra.mxu0 %v1216_v52 }
 0x9dc   :  { %v1924_v61 = vpop.permute.xlu0 %1923  ;;  %v1293_v33 = vpop.permute.xlu1 %1292 }
 0x9dd   :  { %v1926_v3 = vunpack.i.h.bf16 %v1924_v61  ;;  %v1925_v0 = vunpack.i.l.bf16 %v1924_v61  ;;  %v1296_v10 = vsel %vm1207_vm4, %v1293_v33, %v1295_v55 }
 0x9df   :  { %1281 = vmatpush.msra.mxu1 %v1926_v3  ;;  %v1208_v5 = vsel %vm1207_vm4, %v1925_v0, %v1926_v3 }
 0x9e0   :  { %1261 = vmatpush.msra.mxu0 %v1208_v5 }
 0x9e1   :  { %1282 = vmatpush.msra.mxu1 %v1931_v26 }
 0x9e2   :  { %1262 = vmatpush.msra.mxu0 %v1200_v56  ;;  %v2854_v56 = vld [vmem:[%s2969_s1 + $0x18] sm:$0xff] }
 0x9e4   :  { %v1934_v60 = vpop.permute.xlu0 %1933 }
 0x9e5   :  { %v1936_v7 = vunpack.i.h.bf16 %v1934_v60  ;;  %v1935_v9 = vunpack.i.l.bf16 %v1934_v60  ;;  %v82_v60 = vld [vmem:[%s2971_s2 + $0x88] sm:$0xff] }
 0x9e6   :  { %v1954_v6 = vpack.i.bf16 %v82_v60, %v2697_v4 }
 0x9e7   :  { %1283 = vmatpush.msra.mxu1 %v1936_v7  ;;  %v1192_v14 = vsel %vm366_vm11, %v1935_v9, %v1936_v7  ;;  %vm1301_vm11 = vcmask 736256   ;;  %v79_v9 = vld [vmem:[%s2971_s2 + $0x58] sm:$0xff] }
 0x9e8   :  { %1263 = vmatpush.msra.mxu0 %v1192_v14  ;;  %v1969_v14 = vpack.i.bf16 %v79_v9, %v2716_v30  ;;  %v84_v30 = vld [vmem:[%s2971_s2 + $0x98] sm:$0x1] }
 0x9e9   :  { %1284 = vmatpush.msra.mxu1 %v1941_v1  ;;  %v81_v1 = vld [vmem:[%s2971_s2 + $0x78] sm:$0xff] }
 0x9ea   :  { %1264 = vmatpush.msra.mxu0 %v1185_v16  ;;  %v1959_v7 = vpack.i.bf16 %v81_v1, %v2702_v20  ;;  %v78_v16 = vld [vmem:[%s2971_s2 + $0x48] sm:$0xff] }
 0x9eb   :  { %1285 = vmatpush.msra.mxu1 %v2820_v40  ;;  %v1974_v4 = vpack.i.bf16 %v78_v16, %v2723_v32  ;;  %v76_v20 = vld [vmem:[%s2971_s2 + $0x28] sm:$0xff] }
 0x9ec   :  { %v1245_v17 = vpop.permute.xlu0 %1244  ;;  %1265 = vmatpush.msra.mxu0 %v2818_v39 }
 0x9ed   :  { %v1247_v63 = vsel %vm1246_vm8, %v1243_v8, %v1245_v17  ;;  %v75_v8 = vld [vmem:[%s2971_s2 + $0x18] sm:$0xff]  ;;  %v1984_v17 = vpack.i.bf16 %v76_v20, %v2739_v54 }
 0x9ee   :  { %1703 = vmatmul.msk.f32.vlgmr.msra.gmra.mxu0 %vm541_vm13, %v1247_v63  ;;  %1704 = vmatmul.msk.f32.vlgmr.msra.gmra.mxu1 %vm541_vm13, %v1247_v63  ;;  %v1989_v32 = vpack.i.bf16 %v75_v8, %v2751_v58  ;;  %v77_v58 = vld [vmem:[%s2971_s2 + $0x38] sm:$0xff] }
 0xa6b   :  { %v1267_v18 = vpop.f32.mrf.mxu0  ;;  %v1287_v15 = vpop.f32.mrf.mxu1 }
 0xa6c   :  { %v1300_v35 = vmul.f32 %v1295_v55, %v1287_v15  ;;  %v1299_v2 = vmul.f32 %v1296_v10, %v1267_v18  ;;  %v80_v10 = vld [vmem:[%s2971_s2 + $0x68] sm:$0xff] }
 0xa6d   :  { %v1964_v54 = vpack.i.bf16 %v80_v10, %v2709_v29  ;;  %v74_v29 = vld [vmem:[%s2971_s2 + $0x8] sm:$0xff]  ;;  %s2047_s2 = smov 16  }
 0xa6e   :  { %v1307_v12 = vmul.f32 %v1300_v35, %v1287_v15  ;;  %v1302_v13 = vsel %vm1301_vm11, %v1300_v35, 0.0  ;;  %v1306_v22 = vmul.f32 %v1299_v2, %v1267_v18 }
 0xa6f   :  { %v1303_v28 = vadd.f32 %v1302_v13, %v1299_v2 }
 0xa70   :  { %v1308_v31 = vsel %vm1301_vm11, %v1307_v12, 0.0  ;;  %v1979_v12 = vpack.i.bf16 %v77_v58, %v2730_v23 }
 0xa71   :  { %1304 = vadd.xlane.f32.xlu0 %v1303_v28  ;;  %v1309_v27 = vadd.f32 %v1308_v31, %v1306_v22  ;;  %v1994_v22 = vpack.i.bf16 %v74_v29, %v2761_v11 }
 0xa73   :  { %1310 = vadd.xlane.f32.xlu1 %v1309_v27 }
 0xa8c   :  { %1374 = vrot.lane.b32.xlu1 %v2807_v19, %s2045_s15 }
 0xa94   :  { %1955 = vrot.lane.b32.xlu1 %v1954_v6, %s2046_s14 }
 0xa9c   :  { %1970 = vrot.lane.b32.xlu1 %v1969_v14, %s2046_s14 }
 0xaa4   :  { %1985 = vrot.lane.b32.xlu1 %v1984_v17, %s2046_s14 }
 0xae4   :  { %v1305_v36 = vpop.xlane.xlu0 %1304 }
 0xae5   :  { %v1312_v38 = vmul.f32 0.0061728396, %v1305_v36 }
 0xae6   :  { %v1311_v39 = vpop.xlane.xlu1 %1310 }
 0xae7   :  { %v1314_v40 = vmul.f32 %v1312_v38, %v1312_v38  ;;  %v1313_v41 = vmul.f32 0.0061728396, %v1311_v39 }
 0xae9   :  { %v1315_v21 = vsub.f32 %v1313_v41, %v1314_v40 }
 0xaeb   :  { %v1316_v42 = vadd.f32 1e-05, %v1315_v21 }
 0xaed   :  { %2010 = vrsqrt.f32 %v1316_v42  ;;  %vm1323_vm6 = vweird.f32 %v1316_v42 }
 0xaf3   :  { %v2011_v43 = vpop.eup %2010 }
 0xaf4   :  { %v1318_v24 = vmul.f32 %v2011_v43, %v1316_v42  ;;  %vm1324_vm13 = vweird.f32 %v2011_v43 }
 0xaf5   :  { %vm1325_vm7 = vmor %vm1323_vm6, %vm1324_vm13 }
 0xaf6   :  { %v1319_v44 = vmul.f32 %v2011_v43, %v1318_v24 }
 0xaf8   :  { %v1320_v25 = vmul.f32 0.5, %v1319_v44 }
 0xafa   :  { %v1321_v34 = vsub.f32 1.5, %v1320_v25 }
 0xafc   :  { %v1322_v45 = vmul.f32 %v2011_v43, %v1321_v34 }
 0xafe   :  { %v1326_v46 = vsel %vm1325_vm7, %v2011_v43, %v1322_v45  ;;  %v1375_v23 = vpop.permute.xlu1 %1374 }
 0xaff   :  { %v1327_v62 = vmul.f32 %v2807_v19, %v1326_v46 }
 0xb01   :  { %v1328_v47 = vmul.f32 %v1327_v62, %v1312_v38 }
 0xb03   :  { %1330 = vrot.lane.b32.xlu2 %v1328_v47, %s2021_s29 }
 0xb06   :  { %v1956_v40 = vpop.permute.xlu1 %1955 }
 0xb07   :  { %v1958_v43 = vunpack.i.h.bf16 %v1956_v40  ;;  %v1957_v24 = vunpack.i.l.bf16 %v1956_v40 }
 0xb09   :  { %v1497_v34 = vsel %vm1488_vm9, %v1957_v24, %v1958_v43 }
 0xb0b   :  { %1336 = vperm.xlu2 %1942, %v1327_v62  }
 0xb0e   :  { %v1971_v47 = vpop.permute.xlu1 %1970 }
 0xb13   :  { %1943 = vset.pattern.permute.xlu2 %v2044_v48  ;;  %v1973_v48 = vunpack.i.h.bf16 %v1971_v47 }
 0xb5d   :  { %v1331_v49 = vpop.permute.xlu2 %1330 }
 0xb5e   :  { %v1333_v50 = vsub.f32 %v2807_v19, %v1331_v49  ;;  %v1972_v49 = vunpack.i.l.bf16 %v1971_v47 }
 0xb60   :  { %1343 = vperm.xlu2 %1943, %v1333_v50  }
 0xb65   :  { %v1337_v51 = vpop.permute.xlu2 %1336 }
 0xb66   :  { %v1339_v52 = vmul.f32 %v1337_v51, %v1267_v18  ;;  %v1340_v59 = vmul.f32 %v1337_v51, %v1287_v15 }
 0xbba   :  { %v1344_v61 = vpop.permute.xlu2 %1343 }
 0xbbb   :  { %v1346_v26 = vadd.f32 %v1344_v61, %v1339_v52  ;;  %v1347_v53 = vadd.f32 %v1344_v61, %v1340_v59  ;;  %v1494_v59 = vsel %vm1488_vm9, %v1972_v49, %v1973_v48 }
 0xbbd   :  { %v1348_v3 = vmax.f32 %v1346_v26, 0.0  ;;  %v1349_v0 = vmax.f32 %v1347_v53, 0.0 }
 0xbbf   :  { %1354 = vrot.lane.b32.xlu0 %v1349_v0, %s2030_s24  ;;  %v1944_v5 = vpack.i.bf16 %v1348_v3, %v1349_v0 }
 0xbc1   :  { %1945 = vrot.lane.b32.xlu2 %v1944_v5, %s2041_s9 }
 0xbc7   :  { %1484 = vrot.lane.b32.xlu0 %v83_v57, %s2046_s14 }
 0xbc9   :  { %1950 = vrot.lane.b32.xlu2 %v1944_v5, %s2040_s0 }
 0xbcf   :  { %1960 = vrot.lane.b32.xlu0 %v1959_v7, %s2046_s14 }
 0xbd1   :  { %1352 = vrot.lane.b32.xlu2 %v1348_v3, %s2030_s24 }
 0xbd7   :  { %1975 = vrot.lane.b32.xlu0 %v1974_v4, %s2046_s14 }
 0xbd9   :  { %1376 = vrot.lane.b32.xlu2 %v2854_v56, %s2045_s15 }
 0xbdf   :  { %1990 = vrot.lane.b32.xlu0 %v1989_v32, %s2046_s14 }
 0xbe1   :  { %1486 = vrot.lane.b32.xlu2 %v84_v30, %s2046_s14 }
 0xbe9   :  { %1965 = vrot.lane.b32.xlu2 %v1964_v54, %s2046_s14 }
 0xbf1   :  { %1980 = vrot.lane.b32.xlu2 %v1979_v12, %s2046_s14 }
 0xbf9   :  { %1995 = vrot.lane.b32.xlu2 %v1994_v22, %s2046_s14 }
 0xc1b   :  { %v1946_v63 = vpop.permute.xlu2 %1945 }
 0xc1c   :  { %v1948_v33 = vunpack.i.h.bf16 %v1946_v63  ;;  %v1947_v55 = vunpack.i.l.bf16 %v1946_v63 }
 0xc1e   :  { %1417 = vmatpush.msra.mxu2 %v1947_v55  ;;  %v1370_v18 = vsel %vm1207_vm4, %v1948_v33, %v1947_v55 }
 0xc1f   :  { %1394 = vmatpush.msrb.mxu0 %v1370_v18 }
 0xc23   :  { %v1951_v15 = vpop.permute.xlu2 %1950 }
 0xc24   :  { %v1953_v35 = vunpack.i.h.bf16 %v1951_v15  ;;  %v1952_v2 = vunpack.i.l.bf16 %v1951_v15 }
 0xc26   :  { %1418 = vmatpush.msra.mxu2 %v1952_v2  ;;  %v1363_v13 = vsel %vm1199_vm5, %v1953_v35, %v1952_v2 }
 0xc27   :  { %1395 = vmatpush.msrb.mxu0 %v1363_v13 }
 0xc2b   :  { %v1353_v28 = vpop.permute.xlu2 %1352 }
 0xc31   :  { %v1355_v31 = vpop.permute.xlu0 %1354 }
 0xc32   :  { %1419 = vmatpush.msra.mxu2 %v1355_v31  ;;  %v1356_v27 = vsel %vm342_vm12, %v1353_v28, %v1355_v31  ;;  %vm1508_vm12 = vcmask 596992  }
 0xc33   :  { %1396 = vmatpush.msrb.mxu0 %v1356_v27  ;;  %v1377_v36 = vpop.permute.xlu2 %1376 }
 0xc34   :  { %1420 = vmatpush.msra.mxu2 %v1349_v0  ;;  %v1986_v0 = vpop.permute.xlu1 %1985 }
 0xc35   :  { %1397 = vmatpush.msrb.mxu0 %v1348_v3  ;;  %1707 = vmatmul.msk.f32.vlgmr.msra.gmra.mxu2 %vm236_vm1, %v1375_v23  ;;  %v1988_v57 = vunpack.i.h.bf16 %v1986_v0  ;;  %v1987_v60 = vunpack.i.l.bf16 %v1986_v0 }
 0xc36   :  { %1705 = vmatmul.msk.f32.vlgmr.msrb.gmra.mxu0 %vm236_vm1, %v1375_v23 }
 0xc37   :  { %v1491_v9 = vsel %vm1488_vm9, %v1987_v60, %v1988_v57 }
 0xc39   :  { %v1485_v37 = vpop.permute.xlu0 %1484 }
 0xc3b   :  { %v1487_v11 = vpop.permute.xlu2 %1486 }
 0xc3c   :  { %v1498_v38 = vsel %vm1488_vm9, %v1485_v37, %v1487_v11  ;;  %v2048_v37 = vmov 96  }
 0xc3d   :  { %1708 = vmatmul.msk.f32.gmra.mxu2 %vm236_vm1, %v1377_v36  ;;  %1709 = vmatpush.msk.msrb.mxu3 %vm980_vm3, %v1498_v38 }
 0xc3e   :  { %1706 = vmatmul.msk.f32.gmra.mxu0 %vm236_vm1, %v1377_v36  ;;  %1712 = vmatpush.msk.msrb.mxu1 %vm980_vm3, %v1498_v38  ;;  %vm1587_vm3 = vcmask 130048  }
 0xc3f   :  { %1524 = vmatpush.msrb.mxu3 %v1497_v34  ;;  %1999 = vset.pattern.permute.xlu1 %v2048_v37 }
 0xc40   :  { %1563 = vmatpush.msrb.mxu1 %v1497_v34  ;;  %2000 = vset.pattern.permute.xlu0 %v2048_v37 }
 0xc41   :  { %v1961_v41 = vpop.permute.xlu0 %1960 }
 0xc42   :  { %v1963_v44 = vunpack.i.h.bf16 %v1961_v41  ;;  %v1962_v25 = vunpack.i.l.bf16 %v1961_v41 }
 0xc43   :  { %v1966_v39 = vpop.permute.xlu2 %1965 }
 0xc44   :  { %v1968_v21 = vunpack.i.h.bf16 %v1966_v39  ;;  %v1967_v42 = vunpack.i.l.bf16 %v1966_v39  ;;  %v1496_v45 = vsel %vm1488_vm9, %v1962_v25, %v1963_v44 }
 0xc45   :  { %1525 = vmatpush.msrb.mxu3 %v1496_v45  ;;  %1564 = vmatpush.msrb.mxu1 %v1496_v45 }
 0xc46   :  { %v1495_v46 = vsel %vm1488_vm9, %v1967_v42, %v1968_v21 }
 0xc47   :  { %1526 = vmatpush.msrb.mxu3 %v1495_v46  ;;  %1565 = vmatpush.msrb.mxu1 %v1495_v46 }
 0xc49   :  { %v1976_v52 = vpop.permute.xlu0 %1975  ;;  %1527 = vmatpush.msrb.mxu3 %v1494_v59  ;;  %1566 = vmatpush.msrb.mxu1 %v1494_v59 }
 0xc4a   :  { %v1978_v61 = vunpack.i.h.bf16 %v1976_v52  ;;  %v1977_v26 = vunpack.i.l.bf16 %v1976_v52 }
 0xc4b   :  { %v1981_v62 = vpop.permute.xlu2 %1980 }
 0xc4c   :  { %v1983_v50 = vunpack.i.h.bf16 %v1981_v62  ;;  %v1982_v51 = vunpack.i.l.bf16 %v1981_v62  ;;  %v1493_v53 = vsel %vm1488_vm9, %v1977_v26, %v1978_v61 }
 0xc4d   :  { %1528 = vmatpush.msrb.mxu3 %v1493_v53  ;;  %1567 = vmatpush.msrb.mxu1 %v1493_v53 }
 0xc4e   :  { %v1492_v3 = vsel %vm1488_vm9, %v1982_v51, %v1983_v50 }
 0xc4f   :  { %1529 = vmatpush.msrb.mxu3 %v1492_v3  ;;  %1568 = vmatpush.msrb.mxu1 %v1492_v3 }
 0xc51   :  { %v1991_v1 = vpop.permute.xlu0 %1990  ;;  %1530 = vmatpush.msrb.mxu3 %v1491_v9  ;;  %1569 = vmatpush.msrb.mxu1 %v1491_v9  ;;  %v2049_v9 = vmov 97  }
 0xc52   :  { %v1993_v14 = vunpack.i.h.bf16 %v1991_v1  ;;  %v1992_v16 = vunpack.i.l.bf16 %v1991_v1  ;;  %2001 = vset.pattern.permute.xlu2 %v2049_v9 }
 0xc53   :  { %v1996_v5 = vpop.permute.xlu2 %1995 }
 0xc54   :  { %v1998_v6 = vunpack.i.h.bf16 %v1996_v5  ;;  %v1997_v7 = vunpack.i.l.bf16 %v1996_v5  ;;  %v1490_v4 = vsel %vm1488_vm9, %v1992_v16, %v1993_v14 }
 0xc55   :  { %1531 = vmatpush.msrb.mxu3 %v1490_v4  ;;  %1570 = vmatpush.msrb.mxu1 %v1490_v4 }
 0xc56   :  { %v1489_v20 = vsel %vm1488_vm9, %v1997_v7, %v1998_v6 }
 0xc57   :  { %1532 = vmatpush.msrb.mxu3 %v1489_v20  ;;  %1571 = vmatpush.msrb.mxu1 %v1489_v20 }
 0xcb3   :  { %v1399_v8 = vpop.f32.mrf.mxu0 }
 0xcb4   :  { %1542 = vrot.lane.b32.xlu1 %v1399_v8, %s2046_s14  ;;  %1710 = vmatmul.msk.f32.vlgmr.msrb.gmra.mxu3 %vm1508_vm12, %v1399_v8 }
 0xcb8   :  { %v1422_v30 = vpop.f32.mrf.mxu2 }
 0xcb9   :  { %1544 = vrot.lane.b32.xlu0 %v1422_v30, %s2046_s14 }
 0xcbb   :  { %v1402_v17 = vpop.f32.mrf.mxu0 }
 0xcbc   :  { %1546 = vrot.lane.b32.xlu2 %v1402_v17, %s2046_s14  ;;  %1711 = vmatmul.msk.f32.gmra.mxu3 %vm1508_vm12, %v1402_v17 }
 0xcc0   :  { %v1425_v32 = vpop.f32.mrf.mxu2 }
 0xcc1   :  { %1548 = vrot.lane.b32.xlu1 %v1425_v32, %s2046_s14 }
 0xd16   :  { %v1547_v10 = vpop.permute.xlu2 %1546 }
 0xd26   :  { %v1543_v63 = vpop.permute.xlu1 %1542 }
 0xd2b   :  { %v1545_v33 = vpop.permute.xlu0 %1544 }
 0xd2c   :  { %v1550_v55 = vsel %vm1488_vm9, %v1543_v63, %v1545_v33 }
 0xd2d   :  { %1713 = vmatmul.msk.f32.vlgmr.msrb.gmra.mxu1 %vm1508_vm12, %v1550_v55 }
 0xd33   :  { %v1549_v18 = vpop.permute.xlu1 %1548 }
 0xd34   :  { %v1551_v54 = vsel %vm1488_vm9, %v1547_v10, %v1549_v18 }
 0xd35   :  { %1714 = vmatmul.msk.f32.gmra.mxu1 %vm1508_vm12, %v1551_v54 }
 0xd37   :  { %v1534_v35 = vpop.f32.mrf.mxu3 }
 0xd3f   :  { %v1537_v2 = vpop.f32.mrf.mxu3 }
 0xdaa   :  { %v1573_v58 = vpop.f32.mrf.mxu1 }
 0xdab   :  { %1581 = vrot.lane.b32.xlu0 %v1573_v58, %s2047_s2 }
 0xdb2   :  { %v1576_v15 = vpop.f32.mrf.mxu1 }
 0xdb3   :  { %1583 = vrot.lane.b32.xlu2 %v1576_v15, %s2047_s2 }
 0xe0d   :  { %v1584_v12 = vpop.permute.xlu2 %1583 }
 0xe0e   :  { %v2939_v13 = vsel %vm1587_vm3, %v1537_v2, %v1584_v12 }
 0xe0f   :  { %v1593_v29 = vsel %vm236_vm1, %v2939_v13, 0.0  ;;  %v1597_v36 = vmul.f32 %v2939_v13, %v2939_v13 }
 0xe10   :  { %1594 = vadd.xlane.f32.xlu0 %v1593_v29 }
 0xe11   :  { %v1601_v11 = vsel %vm236_vm1, %v1597_v36, 0.0 }
 0xe1d   :  { %v1582_v22 = vpop.permute.xlu0 %1581 }
 0xe1e   :  { %v2943_v28 = vsel %vm1587_vm3, %v1534_v35, %v1582_v22 }
 0xe1f   :  { %v1590_v31 = vsel %vm236_vm1, %v2943_v28, 0.0  ;;  %v1596_v27 = vmul.f32 %v2943_v28, %v2943_v28 }
 0xe20   :  { %1591 = vadd.xlane.f32.xlu1 %v1590_v31 }
 0xe21   :  { %v1598_v23 = vsel %vm236_vm1, %v1596_v27, 0.0 }
 0xe22   :  { %1599 = vadd.xlane.f32.xlu2 %v1598_v23 }
 0xe28   :  { %1602 = vadd.xlane.f32.xlu1 %v1601_v11 }
 0xe83   :  { %v1595_v40 = vpop.xlane.xlu0 %1594 }
 0xe84   :  { %v1605_v43 = vmul.f32 0.03125, %v1595_v40 }
 0xe86   :  { %v1609_v34 = vmul.f32 %v1605_v43, %v1605_v43 }
 0xe93   :  { %v1592_v38 = vpop.xlane.xlu1 %1591 }
 0xe94   :  { %v1604_v39 = vmul.f32 0.03125, %v1592_v38 }
 0xe95   :  { %v1600_v41 = vpop.xlane.xlu2 %1599 }
 0xe96   :  { %v1608_v21 = vmul.f32 %v1604_v39, %v1604_v39  ;;  %v1606_v42 = vmul.f32 0.03125, %v1600_v41 }
 0xe98   :  { %v1610_v24 = vsub.f32 %v1606_v42, %v1608_v21 }
 0xe9a   :  { %v1612_v44 = vadd.f32 1e-05, %v1610_v24 }
 0xe9b   :  { %v1603_v25 = vpop.xlane.xlu1 %1602 }
 0xe9c   :  { %2012 = vrsqrt.f32 %v1612_v44  ;;  %v1607_v45 = vmul.f32 0.03125, %v1603_v25  ;;  %vm1620_vm14 = vweird.f32 %v1612_v44 }
 0xe9e   :  { %v1611_v46 = vsub.f32 %v1607_v45, %v1609_v34 }
 0xea0   :  { %v1613_v62 = vadd.f32 1e-05, %v1611_v46 }
 0xea2   :  { %v2013_v47 = vpop.eup %2012  ;;  %2014 = vrsqrt.f32 %v1613_v62  ;;  %vm1630_vm2 = vweird.f32 %v1613_v62 }
 0xea3   :  { %v1615_v48 = vmul.f32 %v2013_v47, %v1612_v44  ;;  %vm1621_vm10 = vweird.f32 %v2013_v47 }
 0xea4   :  { %vm1622_vm15 = vmor %vm1620_vm14, %vm1621_vm10 }
 0xea5   :  { %v1616_v49 = vmul.f32 %v2013_v47, %v1615_v48 }
 0xea7   :  { %v1617_v50 = vmul.f32 0.5, %v1616_v49 }
 0xea8   :  { %v2015_v51 = vpop.eup %2014 }
 0xea9   :  { %v1618_v52 = vsub.f32 1.5, %v1617_v50  ;;  %v1625_v59 = vmul.f32 %v2015_v51, %v1613_v62  ;;  %vm1631_vm0 = vweird.f32 %v2015_v51 }
 0xeaa   :  { %vm1632_vm4 = vmor %vm1630_vm2, %vm1631_vm0 }
 0xeab   :  { %v1626_v61 = vmul.f32 %v2015_v51, %v1625_v59  ;;  %v1619_v26 = vmul.f32 %v2013_v47, %v1618_v52 }
 0xead   :  { %v1627_v53 = vmul.f32 0.5, %v1626_v61  ;;  %v1623_v3 = vsel %vm1622_vm15, %v2013_v47, %v1619_v26 }
 0xeae   :  { %v1634_v0 = vmul.f32 %v2807_v19, %v1623_v3 }
 0xeaf   :  { %v1628_v5 = vsub.f32 1.5, %v1627_v53 }
 0xeb0   :  { %1650 = vperm.xlu1 %1999, %v1634_v0   ;;  %v1636_v57 = vmul.f32 %v1634_v0, %v1604_v39 }
 0xeb1   :  { %v1629_v60 = vmul.f32 %v2015_v51, %v1628_v5 }
 0xeb2   :  { %1640 = vrot.lane.b32.xlu2 %v1636_v57, %s2021_s29 }
 0xeb3   :  { %v1633_v1 = vsel %vm1632_vm4, %v2015_v51, %v1629_v60 }
 0xeb4   :  { %v1635_v6 = vmul.f32 %v1633_v1, %v2854_v56 }
 0xeb6   :  { %v1637_v7 = vmul.f32 %v1635_v6, %v1605_v43 }
 0xeb8   :  { %1642 = vrot.lane.b32.xlu0 %v1637_v7, %s2021_s29  ;;  %2002 = vset.pattern.permute.xlu1 %v2049_v9 }
 0xec0   :  { %1655 = vperm.xlu0 %2000, %v1635_v6  }
 0xec8   :  { %2003 = vset.pattern.permute.xlu0 %v2049_v9 }
 0xf0c   :  { %v1641_v14 = vpop.permute.xlu2 %1640 }
 0xf0d   :  { %v1646_v16 = vsub.f32 %v2807_v19, %v1641_v14 }
 0xf0f   :  { %1662 = vperm.xlu2 %2001, %v1646_v16  }
 0xf22   :  { %v1651_v8 = vpop.permute.xlu1 %1650 }
 0xf23   :  { %v1658_v30 = vmul.f32 %v1651_v8, %v2943_v28 }
 0xf2a   :  { %v1643_v4 = vpop.permute.xlu0 %1642 }
 0xf2b   :  { %v1647_v20 = vsub.f32 %v2854_v56, %v1643_v4 }
 0xf2d   :  { %1667 = vperm.xlu1 %2002, %v1647_v20  }
 0xf32   :  { %v1656_v33 = vpop.permute.xlu0 %1655 }
 0xf33   :  { %v1659_v55 = vmul.f32 %v1656_v33, %v2939_v13 }
 0xf69   :  { %v1663_v17 = vpop.permute.xlu2 %1662 }
 0xf6a   :  { %v1670_v32 = vadd.f32 %v1663_v17, %v1658_v30 }
 0xf6c   :  { %v1672_v63 = vsel %vm236_vm1, %v1670_v32, 0.0 }
 0xf6d   :  { %1674 = vst [vmem:[%s2972_s3] sm:$0xff] %v1672_v63 }
 0xf9f   :  { %v1668_v19 = vpop.permute.xlu1 %1667 }
 0xfa0   :  { %v1671_v10 = vadd.f32 %v1668_v19, %v1659_v55 }
 0xfa2   :  { %v1673_v18 = vsel %vm236_vm1, %v1671_v10, 0.0 }
 0xfa3   :  { %1675 = vst [vmem:[%s2972_s3 + $0x8] sm:$0xff] %v1673_v18 }

</bundles_post_ra>
